<compile_context>
chip_gen: v5e
topology: v5e:2x2
jax: 0.10.0
libtpu: 0.0.40
codegen_flags: <defaults>
</compile_context>

<pallas_src>
import functools

import jax
import jax.numpy as jnp
import numpy as np
from jax.experimental import pallas as pl
from jax.experimental.pallas import tpu as pltpu


# ----------------------------- glue (plain JAX) -----------------------------

def _circular_pad(zs):
    """F.pad(x, (0, 2, 0, 2), mode='circular') on (B, H, W)."""
    zs = jnp.concatenate([zs, zs[:, :2, :]], axis=1)
    zs = jnp.concatenate([zs, zs[:, :, :2]], axis=2)
    return zs


def _im2col_3x3(xpad, H, W):
    """(B, H+2, W+2) -> (B, H*W, 9); tap order (dh, dw) row-major."""
    B = xpad.shape[0]
    cols = []
    for dh in range(3):
        for dw in range(3):
            cols.append(xpad[:, dh:dh + H, dw:dw + W].reshape(B, H * W))
    return jnp.stack(cols, axis=-1)


def _round_up(x, m):
    return (x + m - 1) // m * m


def _block_diag(w):
    """(L, din, dout) -> (L*din, L*dout) block-diagonal matrix."""
    L, din, dout = w.shape
    eye = jnp.eye(L, dtype=w.dtype)
    return jnp.einsum("lm,lio->limo", eye, w).reshape(L * din, L * dout)


def _pad2(a, rows, cols):
    return jnp.pad(a, ((0, rows - a.shape[0]), (0, cols - a.shape[1])))


# ------------------------------- Pallas kernel ------------------------------

def _model_kernel(patches_ref, wconv_ref, bconv_ref,
                  w1_ref, b1_ref, w2_ref, b2_ref,
                  w3_ref, b3_ref, w4_ref, b4_ref,
                  out_ref, *, hw):
    bt = patches_ref.shape[0]
    kp = wconv_ref.shape[1]

    # Grouped 3x3 conv as one tall matmul on the MXU:
    #   (Bt*HW, 9) @ (9, Kp) + bias, then ReLU.
    x = patches_ref[...].reshape(bt * hw, 9)
    conv = jnp.dot(x, wconv_ref[...], preferred_element_type=jnp.float32)
    conv = jax.nn.relu(conv + bconv_ref[...])                  # (Bt*HW, Kp)

    # Global average pool over the HW spatial positions -> (Bt, Kp).
    feat = jnp.sum(conv.reshape(bt, hw, kp), axis=1) * (1.0 / hw)

    # Per-group MLP batched over Bt rows via block-diagonal weights.
    h = jax.nn.relu(jnp.dot(feat, w1_ref[...],
                            preferred_element_type=jnp.float32) + b1_ref[...])
    h = jax.nn.relu(jnp.dot(h, w2_ref[...],
                            preferred_element_type=jnp.float32) + b2_ref[...])
    h = jax.nn.relu(jnp.dot(h, w3_ref[...],
                            preferred_element_type=jnp.float32) + b3_ref[...])
    out = jnp.dot(h, w4_ref[...],
                  preferred_element_type=jnp.float32) + b4_ref[...]

    # Single unmasked, lane-dense (Bt, 128) store per grid step.
    out_ref[...] = out.astype(out_ref.dtype)


def model_naive_cnn_forward(zs, params, *, layer_bs, block_b=64):
    B, H, W = zs.shape
    HW = H * W
    K = layer_bs * 18

    # Lane-dense padded channel dims (zero padding keeps the math exact).
    Kp = _round_up(K, 128)
    D1p = _round_up(layer_bs * 64, 128)
    D2p = _round_up(layer_bs * 32, 128)
    D3p = _round_up(layer_bs * 32, 128)
    Op = _round_up(layer_bs, 128)

    # Batch tiling: Bt samples per grid step (multiple of 8 sublanes).
    Bt = min(block_b, _round_up(B, 8))
    Bp = _round_up(B, Bt)

    # Host-side glue: circular pad + im2col.
    xpad = _circular_pad(zs)                           # (B, H+2, W+2)
    patches = _im2col_3x3(xpad, H, W)                  # (B, HW, 9)
    patches = jnp.pad(patches, ((0, Bp - B), (0, 0), (0, 0)))

    # Weights: block-diagonalize the BatchLinear stacks, zero-pad to 128 lanes.
    wconv = _pad2(params["wconv"], 9, Kp)
    bconv = _pad2(params["bconv"], 1, Kp)
    w1 = _pad2(_block_diag(params["w1"]), Kp, D1p)
    b1 = _pad2(params["b1"].reshape(1, -1), 1, D1p)
    w2 = _pad2(_block_diag(params["w2"]), D1p, D2p)
    b2 = _pad2(params["b2"].reshape(1, -1), 1, D2p)
    w3 = _pad2(_block_diag(params["w3"]), D2p, D3p)
    b3 = _pad2(params["b3"].reshape(1, -1), 1, D3p)
    w4 = _pad2(_block_diag(params["w4"]), D3p, Op)
    b4 = _pad2(params["b4"].reshape(1, -1), 1, Op)

    kernel = functools.partial(_model_kernel, hw=HW)

    flops = (2 * Bp * HW * 9 * Kp
             + 2 * Bp * (Kp * D1p + D1p * D2p + D2p * D3p + D3p * Op))
    bytes_accessed = 4 * (patches.size + wconv.size + bconv.size
                          + w1.size + b1.size + w2.size + b2.size
                          + w3.size + b3.size + w4.size + b4.size
                          + Bp * Op)
    cost = pl.CostEstimate(flops=flops, transcendentals=0,
                           bytes_accessed=bytes_accessed)

    out = pl.pallas_call(
        kernel,
        out_shape=jax.ShapeDtypeStruct((Bp, Op), jnp.float32),
        grid_spec=pltpu.PrefetchScalarGridSpec(
            num_scalar_prefetch=0,
            grid=(Bp // Bt,),
            in_specs=[
                pl.BlockSpec((Bt, HW, 9), lambda b: (b, 0, 0)),   # patches
                pl.BlockSpec((9, Kp), lambda b: (0, 0)),          # wconv
                pl.BlockSpec((1, Kp), lambda b: (0, 0)),          # bconv
                pl.BlockSpec((Kp, D1p), lambda b: (0, 0)),        # w1 (block-diag)
                pl.BlockSpec((1, D1p), lambda b: (0, 0)),         # b1
                pl.BlockSpec((D1p, D2p), lambda b: (0, 0)),       # w2
                pl.BlockSpec((1, D2p), lambda b: (0, 0)),         # b2
                pl.BlockSpec((D2p, D3p), lambda b: (0, 0)),       # w3
                pl.BlockSpec((1, D3p), lambda b: (0, 0)),         # b3
                pl.BlockSpec((D3p, Op), lambda b: (0, 0)),        # w4
                pl.BlockSpec((1, Op), lambda b: (0, 0)),          # b4
            ],
            out_specs=pl.BlockSpec((Bt, Op), lambda b: (b, 0)),
        ),
        compiler_params=pltpu.CompilerParams(
            dimension_semantics=("parallel",)),
        cost_estimate=cost,
    )(patches, wconv, bconv, w1, b1, w2, b2, w3, b3, w4, b4)

    return out[:B, :layer_bs]


# --------------------------- pure-JAX reference ------------------------------

def reference_forward(zs, params, layer_bs):
    """Mirrors the PyTorch module (NCHW grouped conv + batched MLP)."""
    B, H, W = zs.shape
    K = layer_bs * 18
    xpad = _circular_pad(zs)[:, None, :, :]                 # (B, 1, H+2, W+2)
    xpad = jnp.tile(xpad, (1, layer_bs, 1, 1))              # repeat over layer_bs
    w = params["wconv"].T.reshape(K, 1, 3, 3)               # PyTorch OIHW layout
    conv = jax.lax.conv_general_dilated(
        xpad, w, window_strides=(1, 1), padding="VALID",
        dimension_numbers=("NCHW", "OIHW", "NCHW"),
        feature_group_count=layer_bs)
    conv = conv + params["bconv"][0][None, :, None, None]
    conv = jax.nn.relu(conv)
    feat = jnp.mean(conv, axis=(2, 3)).reshape(B, layer_bs, 18)

    h = feat
    h = jax.nn.relu(jnp.einsum("blx,lxy->bly", h, params["w1"]) + params["b1"][:, 0, :])
    h = jax.nn.relu(jnp.einsum("blx,lxy->bly", h, params["w2"]) + params["b2"][:, 0, :])
    h = jax.nn.relu(jnp.einsum("blx,lxy->bly", h, params["w3"]) + params["b3"][:, 0, :])
    out = jnp.einsum("blx,lxo->blo", h, params["w4"])[..., 0] + params["b4"][:, 0, 0]
    return out


# ------------------------------- parameters ---------------------------------

def init_params(key, layer_bs):
    K = layer_bs * 18
    keys = jax.random.split(key, 10)

    def init(k, shape, fan_in, scale=1.0):
        return scale * jax.random.normal(k, shape, jnp.float32) / jnp.sqrt(fan_in)

    return dict(
        wconv=init(keys[0], (9, K), 9.0),
        bconv=init(keys[1], (1, K), 9.0, 0.1),
        w1=init(keys[2], (layer_bs, 18, 64), 18.0),
        b1=init(keys[3], (layer_bs, 1, 64), 18.0, 0.1),
        w2=init(keys[4], (layer_bs, 64, 32), 64.0),
        b2=init(keys[5], (layer_bs, 1, 32), 64.0, 0.1),
        w3=init(keys[6], (layer_bs, 32, 32), 32.0),
        b3=init(keys[7], (layer_bs, 1, 32), 32.0, 0.1),
        w4=init(keys[8], (layer_bs, 32, 1), 32.0),
        b4=init(keys[9], (layer_bs, 1, 1), 32.0, 0.1),
    )


# ---------------------------------- main -------------------------------------

if __name__ == "__main__":
    B, H, W, layer_bs = 2, 16, 16, 2
    key = jax.random.PRNGKey(0)
    kz, kp = jax.random.split(key)

    # Ising-like +/-1 spin configurations.
    zs = jnp.sign(jax.random.normal(kz, (B, H, W), jnp.float32))
    zs = jnp.where(zs == 0, 1.0, zs)

    params = init_params(kp, layer_bs)

    out = model_naive_cnn_forward(zs, params, layer_bs=layer_bs)
    out = jax.block_until_ready(out)
    assert out.shape == (B, layer_bs), out.shape

    ref = jax.block_until_ready(reference_forward(zs, params, layer_bs))
    # Loose tolerance: MXU f32 matmuls may use reduced-precision passes.
    assert np.allclose(np.asarray(out), np.asarray(ref), rtol=2e-2, atol=2e-2)

    print("KERNEL_OK")
</pallas_src>

<mosaic_0001>
module attributes {stable_mosaic.version = 11 : i64} {
  func.func @_model_kernel(%arg0: i32, %arg1: memref<8x256x9xf32, #tpu.memory_space<vmem>>, %arg2: memref<9x128xf32, #tpu.memory_space<vmem>>, %arg3: memref<1x128xf32, #tpu.memory_space<vmem>>, %arg4: memref<128x128xf32, #tpu.memory_space<vmem>>, %arg5: memref<1x128xf32, #tpu.memory_space<vmem>>, %arg6: memref<128x128xf32, #tpu.memory_space<vmem>>, %arg7: memref<1x128xf32, #tpu.memory_space<vmem>>, %arg8: memref<128x128xf32, #tpu.memory_space<vmem>>, %arg9: memref<1x128xf32, #tpu.memory_space<vmem>>, %arg10: memref<128x128xf32, #tpu.memory_space<vmem>>, %arg11: memref<1x128xf32, #tpu.memory_space<vmem>>, %arg12: memref<8x128xf32, #tpu.memory_space<vmem>>) attributes {dimension_semantics = [#tpu.dimension_semantics<parallel>], iteration_bounds = array<i64: 1>, scalar_prefetch = 0 : i64, scratch_operands = 0 : i64, tpu.core_type = #tpu.core_type<tc>, window_params = [{transform_indices = @transform_0, window_bounds = array<i64: 8, 256, 9>}, {pipeline_mode = #tpu.pipeline_mode<synchronous>, transform_indices = @transform_1, window_bounds = array<i64: 9, 128>}, {pipeline_mode = #tpu.pipeline_mode<synchronous>, transform_indices = @transform_2, window_bounds = array<i64: 1, 128>}, {pipeline_mode = #tpu.pipeline_mode<synchronous>, transform_indices = @transform_3, window_bounds = array<i64: 128, 128>}, {pipeline_mode = #tpu.pipeline_mode<synchronous>, transform_indices = @transform_4, window_bounds = array<i64: 1, 128>}, {pipeline_mode = #tpu.pipeline_mode<synchronous>, transform_indices = @transform_5, window_bounds = array<i64: 128, 128>}, {pipeline_mode = #tpu.pipeline_mode<synchronous>, transform_indices = @transform_6, window_bounds = array<i64: 1, 128>}, {pipeline_mode = #tpu.pipeline_mode<synchronous>, transform_indices = @transform_7, window_bounds = array<i64: 128, 128>}, {pipeline_mode = #tpu.pipeline_mode<synchronous>, transform_indices = @transform_8, window_bounds = array<i64: 1, 128>}, {pipeline_mode = #tpu.pipeline_mode<synchronous>, transform_indices = @transform_9, window_bounds = array<i64: 128, 128>}, {pipeline_mode = #tpu.pipeline_mode<synchronous>, transform_indices = @transform_10, window_bounds = array<i64: 1, 128>}, {transform_indices = @transform_11, window_bounds = array<i64: 8, 128>}]} {
    %c0 = arith.constant 0 : index
    %c0_0 = arith.constant 0 : index
    %c0_1 = arith.constant 0 : index
    %0 = vector.load %arg1[%c0, %c0_0, %c0_1] : memref<8x256x9xf32, #tpu.memory_space<vmem>>, vector<8x256x9xf32>
    %1 = vector.shape_cast %0 : vector<8x256x9xf32> to vector<2048x9xf32>
    %c0_2 = arith.constant 0 : index
    %c0_3 = arith.constant 0 : index
    %2 = vector.load %arg2[%c0_2, %c0_3] : memref<9x128xf32, #tpu.memory_space<vmem>>, vector<9x128xf32>
    %cst = arith.constant dense<0.000000e+00> : vector<2048x128xf32>
    %3 = tpu.matmul %1, %2, %cst {dimension_numbers = #tpu.dot_dimension_numbers<[1], [0], [0], [1], [0, 0, 1, 1], [], []>} : vector<2048x9xf32>, vector<9x128xf32>, vector<2048x128xf32> -> vector<2048x128xf32>
    %c0_4 = arith.constant 0 : index
    %c0_5 = arith.constant 0 : index
    %4 = vector.load %arg3[%c0_4, %c0_5] : memref<1x128xf32, #tpu.memory_space<vmem>>, vector<1x128xf32>
    %5 = vector.broadcast %4 : vector<1x128xf32> to vector<2048x128xf32>
    %6 = arith.addf %3, %5 : vector<2048x128xf32>
    %cst_6 = arith.constant 0.000000e+00 : f32
    %7 = vector.broadcast %cst_6 : f32 to vector<2048x128xf32>
    %8 = arith.maximumf %6, %7 : vector<2048x128xf32>
    %9 = vector.shape_cast %8 : vector<2048x128xf32> to vector<8x256x128xf32>
    %cst_7 = arith.constant dense<0.000000e+00> : vector<8x128xf32>
    %10 = vector.multi_reduction <add>, %9, %cst_7 [1] : vector<8x256x128xf32> to vector<8x128xf32>
    %cst_8 = arith.constant 3.906250e-03 : f32
    %11 = vector.broadcast %cst_8 : f32 to vector<8x128xf32>
    %12 = arith.mulf %10, %11 : vector<8x128xf32>
    %c0_9 = arith.constant 0 : index
    %c0_10 = arith.constant 0 : index
    %13 = vector.load %arg4[%c0_9, %c0_10] : memref<128x128xf32, #tpu.memory_space<vmem>>, vector<128x128xf32>
    %cst_11 = arith.constant dense<0.000000e+00> : vector<8x128xf32>
    %14 = tpu.matmul %12, %13, %cst_11 {dimension_numbers = #tpu.dot_dimension_numbers<[1], [0], [0], [1], [0, 0, 1, 1], [], []>} : vector<8x128xf32>, vector<128x128xf32>, vector<8x128xf32> -> vector<8x128xf32>
    %c0_12 = arith.constant 0 : index
    %c0_13 = arith.constant 0 : index
    %15 = vector.load %arg5[%c0_12, %c0_13] : memref<1x128xf32, #tpu.memory_space<vmem>>, vector<1x128xf32>
    %16 = vector.broadcast %15 : vector<1x128xf32> to vector<8x128xf32>
    %17 = arith.addf %14, %16 : vector<8x128xf32>
    %cst_14 = arith.constant 0.000000e+00 : f32
    %18 = vector.broadcast %cst_14 : f32 to vector<8x128xf32>
    %19 = arith.maximumf %17, %18 : vector<8x128xf32>
    %c0_15 = arith.constant 0 : index
    %c0_16 = arith.constant 0 : index
    %20 = vector.load %arg6[%c0_15, %c0_16] : memref<128x128xf32, #tpu.memory_space<vmem>>, vector<128x128xf32>
    %cst_17 = arith.constant dense<0.000000e+00> : vector<8x128xf32>
    %21 = tpu.matmul %19, %20, %cst_17 {dimension_numbers = #tpu.dot_dimension_numbers<[1], [0], [0], [1], [0, 0, 1, 1], [], []>} : vector<8x128xf32>, vector<128x128xf32>, vector<8x128xf32> -> vector<8x128xf32>
    %c0_18 = arith.constant 0 : index
    %c0_19 = arith.constant 0 : index
    %22 = vector.load %arg7[%c0_18, %c0_19] : memref<1x128xf32, #tpu.memory_space<vmem>>, vector<1x128xf32>
    %23 = vector.broadcast %22 : vector<1x128xf32> to vector<8x128xf32>
    %24 = arith.addf %21, %23 : vector<8x128xf32>
    %cst_20 = arith.constant 0.000000e+00 : f32
    %25 = vector.broadcast %cst_20 : f32 to vector<8x128xf32>
    %26 = arith.maximumf %24, %25 : vector<8x128xf32>
    %c0_21 = arith.constant 0 : index
    %c0_22 = arith.constant 0 : index
    %27 = vector.load %arg8[%c0_21, %c0_22] : memref<128x128xf32, #tpu.memory_space<vmem>>, vector<128x128xf32>
    %cst_23 = arith.constant dense<0.000000e+00> : vector<8x128xf32>
    %28 = tpu.matmul %26, %27, %cst_23 {dimension_numbers = #tpu.dot_dimension_numbers<[1], [0], [0], [1], [0, 0, 1, 1], [], []>} : vector<8x128xf32>, vector<128x128xf32>, vector<8x128xf32> -> vector<8x128xf32>
    %c0_24 = arith.constant 0 : index
    %c0_25 = arith.constant 0 : index
    %29 = vector.load %arg9[%c0_24, %c0_25] : memref<1x128xf32, #tpu.memory_space<vmem>>, vector<1x128xf32>
    %30 = vector.broadcast %29 : vector<1x128xf32> to vector<8x128xf32>
    %31 = arith.addf %28, %30 : vector<8x128xf32>
    %cst_26 = arith.constant 0.000000e+00 : f32
    %32 = vector.broadcast %cst_26 : f32 to vector<8x128xf32>
    %33 = arith.maximumf %31, %32 : vector<8x128xf32>
    %c0_27 = arith.constant 0 : index
    %c0_28 = arith.constant 0 : index
    %34 = vector.load %arg10[%c0_27, %c0_28] : memref<128x128xf32, #tpu.memory_space<vmem>>, vector<128x128xf32>
    %cst_29 = arith.constant dense<0.000000e+00> : vector<8x128xf32>
    %35 = tpu.matmul %33, %34, %cst_29 {dimension_numbers = #tpu.dot_dimension_numbers<[1], [0], [0], [1], [0, 0, 1, 1], [], []>} : vector<8x128xf32>, vector<128x128xf32>, vector<8x128xf32> -> vector<8x128xf32>
    %c0_30 = arith.constant 0 : index
    %c0_31 = arith.constant 0 : index
    %36 = vector.load %arg11[%c0_30, %c0_31] : memref<1x128xf32, #tpu.memory_space<vmem>>, vector<1x128xf32>
    %37 = vector.broadcast %36 : vector<1x128xf32> to vector<8x128xf32>
    %38 = arith.addf %35, %37 : vector<8x128xf32>
    %c0_32 = arith.constant 0 : index
    %c0_33 = arith.constant 0 : index
    %39 = vector.load %arg12[%c0_32, %c0_33] : memref<8x128xf32, #tpu.memory_space<vmem>>, vector<8x128xf32>
    tpu.vector_store %arg12[%c0_32, %c0_33], %38 {strides = array<i32>} : memref<8x128xf32, #tpu.memory_space<vmem>>, vector<8x128xf32>,
    return
  }
  func.func @transform_0(%arg0: i32) -> (i32, i32, i32) {
    %c0_i32 = arith.constant 0 : i32
    %c0_i32_0 = arith.constant 0 : i32
    %c0_i32_1 = arith.constant 0 : i32
    return %arg0, %c0_i32, %c0_i32_0 : i32, i32, i32
  }
  func.func @transform_1(%arg0: i32) -> (i32, i32) {
    %c0_i32 = arith.constant 0 : i32
    %c0_i32_0 = arith.constant 0 : i32
    %c0_i32_1 = arith.constant 0 : i32
    return %c0_i32, %c0_i32_0 : i32, i32
  }
  func.func @transform_2(%arg0: i32) -> (i32, i32) {
    %c0_i32 = arith.constant 0 : i32
    %c0_i32_0 = arith.constant 0 : i32
    %c0_i32_1 = arith.constant 0 : i32
    return %c0_i32, %c0_i32_0 : i32, i32
  }
  func.func @transform_3(%arg0: i32) -> (i32, i32) {
    %c0_i32 = arith.constant 0 : i32
    %c0_i32_0 = arith.constant 0 : i32
    %c0_i32_1 = arith.constant 0 : i32
    return %c0_i32, %c0_i32_0 : i32, i32
  }
  func.func @transform_4(%arg0: i32) -> (i32, i32) {
    %c0_i32 = arith.constant 0 : i32
    %c0_i32_0 = arith.constant 0 : i32
    %c0_i32_1 = arith.constant 0 : i32
    return %c0_i32, %c0_i32_0 : i32, i32
  }
  func.func @transform_5(%arg0: i32) -> (i32, i32) {
    %c0_i32 = arith.constant 0 : i32
    %c0_i32_0 = arith.constant 0 : i32
    %c0_i32_1 = arith.constant 0 : i32
    return %c0_i32, %c0_i32_0 : i32, i32
  }
  func.func @transform_6(%arg0: i32) -> (i32, i32) {
    %c0_i32 = arith.constant 0 : i32
    %c0_i32_0 = arith.constant 0 : i32
    %c0_i32_1 = arith.constant 0 : i32
    return %c0_i32, %c0_i32_0 : i32, i32
  }
  func.func @transform_7(%arg0: i32) -> (i32, i32) {
    %c0_i32 = arith.constant 0 : i32
    %c0_i32_0 = arith.constant 0 : i32
    %c0_i32_1 = arith.constant 0 : i32
    return %c0_i32, %c0_i32_0 : i32, i32
  }
  func.func @transform_8(%arg0: i32) -> (i32, i32) {
    %c0_i32 = arith.constant 0 : i32
    %c0_i32_0 = arith.constant 0 : i32
    %c0_i32_1 = arith.constant 0 : i32
    return %c0_i32, %c0_i32_0 : i32, i32
  }
  func.func @transform_9(%arg0: i32) -> (i32, i32) {
    %c0_i32 = arith.constant 0 : i32
    %c0_i32_0 = arith.constant 0 : i32
    %c0_i32_1 = arith.constant 0 : i32
    return %c0_i32, %c0_i32_0 : i32, i32
  }
  func.func @transform_10(%arg0: i32) -> (i32, i32) {
    %c0_i32 = arith.constant 0 : i32
    %c0_i32_0 = arith.constant 0 : i32
    %c0_i32_1 = arith.constant 0 : i32
    return %c0_i32, %c0_i32_0 : i32, i32
  }
  func.func @transform_11(%arg0: i32) -> (i32, i32) {
    %c0_i32 = arith.constant 0 : i32
    %c0_i32_0 = arith.constant 0 : i32
    return %arg0, %c0_i32 : i32, i32
  }
}

</mosaic_0001>

<bundles_post_ra>
// kernel: tpu_custom_call.1
= control target key start
LH: loop header
LB: loop body
LE: loop exit
PB: predicated region body
PF: predicated region fallthrough
CT: control target
= control target key end

     0   :  { %vm1070_vm0 = vcmask 1040384   ;;  %vm301_vm1 = vcmask 72704   ;;  %s4787_s0 = inlined_call_operand.vmem [shape: f32[8,256,9], index: 0, kind: input, shape index: {}]   ;;  %s4788_s1 = inlined_call_operand.vmem [shape: f32[9,128], index: 1, kind: input, shape index: {}]   ;;  %s4789_s2 = inlined_call_operand.vmem [shape: f32[1,128], index: 2, kind: input, shape index: {}]   ;;  %s4790_s3 = inlined_call_operand.vmem [shape: f32[128,128], index: 3, kind: input, shape index: {}]   ;;  %s4791_s4 = inlined_call_operand.vmem [shape: f32[1,128], index: 4, kind: input, shape index: {}]   ;;  %s4792_s5 = inlined_call_operand.vmem [shape: f32[128,128], index: 5, kind: input, shape index: {}]   ;;  %s4793_s6 = inlined_call_operand.vmem [shape: f32[1,128], index: 6, kind: input, shape index: {}]   ;;  %s4794_s7 = inlined_call_operand.vmem [shape: f32[128,128], index: 7, kind: input, shape index: {}]   ;;  %s4795_s8 = inlined_call_operand.vmem [shape: f32[1,128], index: 8, kind: input, shape index: {}]   ;;  %s4796_s9 = inlined_call_operand.vmem [shape: f32[128,128], index: 9, kind: input, shape index: {}]   ;;  %s4797_s10 = inlined_call_operand.vmem [shape: f32[1,128], index: 10, kind: input, shape index: {}]   ;;  %s4798_s11 = inlined_call_operand.hbm [shape: f32[8,128], index: 11, kind: output, shape index: {}]  }
   0x1   :  { %v296_v0 = vld [vmem:[%s4788_s1 + $0x8] sm:$0x1]  ;;  %v295_v1 = vld [vmem:[%s4788_s1] sm:$0xff]  ;;  %v230_v5 = vld [vmem:[%s4787_s0 + $0x5f8] sm:$0xff] }
   0x2   :  { %2622 = vmatpush.msk.msra.mxu0 %vm1070_vm0, %v296_v0  ;;  %2879 = vmatpush.msk.msra.mxu1 %vm1070_vm0, %v296_v0  ;;  %v39_v2 = vld [vmem:[%s4787_s0] sm:$0xff]  ;;  %v164_v4 = vld [vmem:[%s4787_s0 + $0x3e8] sm:$0xff] }
   0x3   :  { %2880 = vmatpush.msk.msra.mxu2 %vm1070_vm0, %v296_v0  ;;  %2881 = vmatpush.msk.msra.mxu3 %vm1070_vm0, %v296_v0  ;;  %v107_v3 = vld [vmem:[%s4787_s0 + $0x220] sm:$0xff] }
   0x4   :  { %1089 = vmatpush.msra.mxu0 %v295_v1  ;;  %2882 = vmatpush.msra.mxu1 %v295_v1 }
   0x5   :  { %2883 = vmatpush.msra.mxu2 %v295_v1  ;;  %2884 = vmatpush.msra.mxu3 %v295_v1 }
   0x6   :  { %2623 = vmatmul.msk.f32.vlgmr.msra.gmra.mxu0 %vm301_vm1, %v39_v2  ;;  %2691 = vmatmul.msk.f32.vlgmr.msra.gmra.mxu1 %vm301_vm1, %v107_v3 }
   0x7   :  { %2748 = vmatmul.msk.f32.vlgmr.msra.gmra.mxu2 %vm301_vm1, %v164_v4  ;;  %2814 = vmatmul.msk.f32.vlgmr.msra.gmra.mxu3 %vm301_vm1, %v230_v5 }
   0x8   :  { %16 = vsyncpa [#allocation3], 0  ;;  %v40_v6 = vld [vmem:[%s4787_s0 + $0x8] sm:$0xff]  ;;  %v165_v8 = vld [vmem:[%s4787_s0 + $0x3f0] sm:$0xff]  ;;  %vm2447_vm2 = vcmask 1041409   ;;  %vm2449_vm3 = vcmask 1042434  }
   0x9   :  { %v108_v7 = vld [vmem:[%s4787_s0 + $0x228] sm:$0xff]  ;;  %v231_v9 = vld [vmem:[%s4787_s0 + $0x600] sm:$0xff]  ;;  %v41_v10 = vld [vmem:[%s4787_s0 + $0x10] sm:$0xff]  ;;  %vm2451_vm4 = vcmask 1043459   ;;  %vm2453_vm5 = vcmask 1044484   ;;  %vm2455_vm6 = vcmask 1045509  }
   0xa   :  { %v109_v11 = vld [vmem:[%s4787_s0 + $0x230] sm:$0xff]  ;;  %v166_v12 = vld [vmem:[%s4787_s0 + $0x3f8] sm:$0xff]  ;;  %v232_v13 = vld [vmem:[%s4787_s0 + $0x608] sm:$0xff]  ;;  %vm2457_vm7 = vcmask 1046534   ;;  %vm2459_vm8 = vcmask 1047559   ;;  %s2613_s19 = sshll.u32 %s4798_s11, 4  ;;  %s2614_s19 = int_to_ptr.hbm [resolvable:$true] %s2613_s19 }
   0xb   :  { %v42_v14 = vld [vmem:[%s4787_s0 + $0x18] sm:$0xff]  ;;  %v167_v16 = vld [vmem:[%s4787_s0 + $0x400] sm:$0xff]  ;;  %v233_v17 = vld [vmem:[%s4787_s0 + $0x610] sm:$0xff] }
   0xc   :  { %v110_v15 = vld [vmem:[%s4787_s0 + $0x238] sm:$0xff]  ;;  %v43_v18 = vld [vmem:[%s4787_s0 + $0x20] sm:$0xff]  ;;  %v168_v20 = vld [vmem:[%s4787_s0 + $0x408] sm:$0xff] }
   0xd   :  { %v111_v19 = vld [vmem:[%s4787_s0 + $0x240] sm:$0xff]  ;;  %v234_v21 = vld [vmem:[%s4787_s0 + $0x618] sm:$0xff]  ;;  %v44_v22 = vld [vmem:[%s4787_s0 + $0x28] sm:$0xff] }
   0xe   :  { %2624 = vmatmul.msk.f32.gmra.mxu0 %vm301_vm1, %v40_v6  ;;  %2692 = vmatmul.msk.f32.gmra.mxu1 %vm301_vm1, %v108_v7  ;;  %v112_v23 = vld [vmem:[%s4787_s0 + $0x248] sm:$0xff]  ;;  %v169_v24 = vld [vmem:[%s4787_s0 + $0x410] sm:$0xff]  ;;  %v235_v25 = vld [vmem:[%s4787_s0 + $0x620] sm:$0xff] }
   0xf   :  { %2749 = vmatmul.msk.f32.gmra.mxu2 %vm301_vm1, %v165_v8  ;;  %2815 = vmatmul.msk.f32.gmra.mxu3 %vm301_vm1, %v231_v9  ;;  %v45_v26 = vld [vmem:[%s4787_s0 + $0x30] sm:$0xff]  ;;  %v170_v28 = vld [vmem:[%s4787_s0 + $0x418] sm:$0xff]  ;;  %v236_v29 = vld [vmem:[%s4787_s0 + $0x628] sm:$0xff] }
  0x10   :  { %v113_v27 = vld [vmem:[%s4787_s0 + $0x250] sm:$0xff]  ;;  %v46_v30 = vld [vmem:[%s4787_s0 + $0x38] sm:$0xff]  ;;  %v171_v32 = vld [vmem:[%s4787_s0 + $0x420] sm:$0xff] }
  0x11   :  { %v114_v31 = vld [vmem:[%s4787_s0 + $0x258] sm:$0xff]  ;;  %v237_v33 = vld [vmem:[%s4787_s0 + $0x630] sm:$0xff]  ;;  %v47_v34 = vld [vmem:[%s4787_s0 + $0x40] sm:$0xff] }
  0x12   :  { %v115_v35 = vld [vmem:[%s4787_s0 + $0x260] sm:$0xff]  ;;  %v172_v36 = vld [vmem:[%s4787_s0 + $0x428] sm:$0xff]  ;;  %v238_v37 = vld [vmem:[%s4787_s0 + $0x638] sm:$0xff] }
  0x13   :  { %v48_v38 = vld [vmem:[%s4787_s0 + $0x48] sm:$0xff]  ;;  %v173_v40 = vld [vmem:[%s4787_s0 + $0x430] sm:$0xff]  ;;  %v239_v41 = vld [vmem:[%s4787_s0 + $0x640] sm:$0xff] }
  0x14   :  { %v116_v39 = vld [vmem:[%s4787_s0 + $0x268] sm:$0xff]  ;;  %v49_v42 = vld [vmem:[%s4787_s0 + $0x50] sm:$0xff]  ;;  %v174_v44 = vld [vmem:[%s4787_s0 + $0x438] sm:$0xff] }
  0x15   :  { %v117_v43 = vld [vmem:[%s4787_s0 + $0x270] sm:$0xff]  ;;  %v240_v45 = vld [vmem:[%s4787_s0 + $0x648] sm:$0xff]  ;;  %v50_v46 = vld [vmem:[%s4787_s0 + $0x58] sm:$0xff] }
  0x16   :  { %2625 = vmatmul.msk.f32.gmra.mxu0 %vm301_vm1, %v41_v10  ;;  %2693 = vmatmul.msk.f32.gmra.mxu1 %vm301_vm1, %v109_v11  ;;  %v118_v47 = vld [vmem:[%s4787_s0 + $0x278] sm:$0xff]  ;;  %v175_v48 = vld [vmem:[%s4787_s0 + $0x440] sm:$0xff]  ;;  %v241_v49 = vld [vmem:[%s4787_s0 + $0x650] sm:$0xff] }
  0x17   :  { %2750 = vmatmul.msk.f32.gmra.mxu2 %vm301_vm1, %v166_v12  ;;  %2816 = vmatmul.msk.f32.gmra.mxu3 %vm301_vm1, %v232_v13  ;;  %v51_v50 = vld [vmem:[%s4787_s0 + $0x60] sm:$0xff]  ;;  %v176_v52 = vld [vmem:[%s4787_s0 + $0x448] sm:$0xff]  ;;  %v242_v53 = vld [vmem:[%s4787_s0 + $0x658] sm:$0xff] }
  0x18   :  { %v119_v51 = vld [vmem:[%s4787_s0 + $0x280] sm:$0xff]  ;;  %v52_v54 = vld [vmem:[%s4787_s0 + $0x68] sm:$0xff]  ;;  %v177_v56 = vld [vmem:[%s4787_s0 + $0x450] sm:$0xff] }
  0x19   :  { %v120_v55 = vld [vmem:[%s4787_s0 + $0x288] sm:$0xff]  ;;  %v243_v57 = vld [vmem:[%s4787_s0 + $0x660] sm:$0xff]  ;;  %v53_v58 = vld [vmem:[%s4787_s0 + $0x70] sm:$0xff] }
  0x1a   :  { %v121_v59 = vld [vmem:[%s4787_s0 + $0x290] sm:$0xff]  ;;  %v178_v60 = vld [vmem:[%s4787_s0 + $0x458] sm:$0xff]  ;;  %v244_v61 = vld [vmem:[%s4787_s0 + $0x668] sm:$0xff] }
  0x1b   :  { %v54_v62 = vld [vmem:[%s4787_s0 + $0x78] sm:$0xff]  ;;  %v179_v0 = vld [vmem:[%s4787_s0 + $0x460] sm:$0xff]  ;;  %v245_v1 = vld [vmem:[%s4787_s0 + $0x670] sm:$0xff] }
  0x1c   :  { %v122_v63 = vld [vmem:[%s4787_s0 + $0x298] sm:$0xff]  ;;  %v55_v4 = vld [vmem:[%s4787_s0 + $0x80] sm:$0xff]  ;;  %v180_v6 = vld [vmem:[%s4787_s0 + $0x468] sm:$0xff] }
  0x1d   :  { %v123_v5 = vld [vmem:[%s4787_s0 + $0x2a0] sm:$0xff]  ;;  %v246_v7 = vld [vmem:[%s4787_s0 + $0x678] sm:$0xff]  ;;  %v56_v12 = vld [vmem:[%s4787_s0 + $0x88] sm:$0xff] }
  0x1e   :  { %2626 = vmatmul.msk.f32.gmra.mxu0 %vm301_vm1, %v42_v14  ;;  %2694 = vmatmul.msk.f32.gmra.mxu1 %vm301_vm1, %v110_v15  ;;  %v124_v13 = vld [vmem:[%s4787_s0 + $0x2a8] sm:$0xff]  ;;  %v181_v14 = vld [vmem:[%s4787_s0 + $0x470] sm:$0xff]  ;;  %v247_v15 = vld [vmem:[%s4787_s0 + $0x680] sm:$0xff] }
  0x1f   :  { %2751 = vmatmul.msk.f32.gmra.mxu2 %vm301_vm1, %v167_v16  ;;  %2817 = vmatmul.msk.f32.gmra.mxu3 %vm301_vm1, %v233_v17 }
  0x26   :  { %2627 = vmatmul.msk.f32.gmra.mxu0 %vm301_vm1, %v43_v18  ;;  %2695 = vmatmul.msk.f32.gmra.mxu1 %vm301_vm1, %v111_v19 }
  0x27   :  { %2752 = vmatmul.msk.f32.gmra.mxu2 %vm301_vm1, %v168_v20  ;;  %2818 = vmatmul.msk.f32.gmra.mxu3 %vm301_vm1, %v234_v21  ;;  %v57_v20 = vld [vmem:[%s4787_s0 + $0x90] sm:$0xff] }
  0x28   :  { %v125_v21 = vld [vmem:[%s4787_s0 + $0x2b0] sm:$0xff] }
  0x2e   :  { %2628 = vmatmul.msk.f32.gmra.mxu0 %vm301_vm1, %v44_v22  ;;  %2696 = vmatmul.msk.f32.gmra.mxu1 %vm301_vm1, %v112_v23  ;;  %v182_v22 = vld [vmem:[%s4787_s0 + $0x478] sm:$0xff]  ;;  %v248_v23 = vld [vmem:[%s4787_s0 + $0x688] sm:$0xff] }
  0x2f   :  { %2753 = vmatmul.msk.f32.gmra.mxu2 %vm301_vm1, %v169_v24  ;;  %2819 = vmatmul.msk.f32.gmra.mxu3 %vm301_vm1, %v235_v25  ;;  %v3307_v24 = vld [vmem:[%s4789_s2] ss:$0 sm:$0xff] }
  0x36   :  { %2629 = vmatmul.msk.f32.gmra.mxu0 %vm301_vm1, %v45_v26  ;;  %2697 = vmatmul.msk.f32.gmra.mxu1 %vm301_vm1, %v113_v27 }
  0x37   :  { %2754 = vmatmul.msk.f32.gmra.mxu2 %vm301_vm1, %v170_v28  ;;  %2820 = vmatmul.msk.f32.gmra.mxu3 %vm301_vm1, %v236_v29 }
  0x3e   :  { %2630 = vmatmul.msk.f32.gmra.mxu0 %vm301_vm1, %v46_v30  ;;  %2698 = vmatmul.msk.f32.gmra.mxu1 %vm301_vm1, %v114_v31 }
  0x3f   :  { %2755 = vmatmul.msk.f32.gmra.mxu2 %vm301_vm1, %v171_v32  ;;  %2821 = vmatmul.msk.f32.gmra.mxu3 %vm301_vm1, %v237_v33  ;;  %v58_v32 = vld [vmem:[%s4787_s0 + $0x98] sm:$0xff] }
  0x40   :  { %v126_v33 = vld [vmem:[%s4787_s0 + $0x2b8] sm:$0xff] }
  0x46   :  { %2631 = vmatmul.msk.f32.gmra.mxu0 %vm301_vm1, %v47_v34  ;;  %2699 = vmatmul.msk.f32.gmra.mxu1 %vm301_vm1, %v115_v35  ;;  %v183_v34 = vld [vmem:[%s4787_s0 + $0x480] sm:$0xff]  ;;  %v249_v35 = vld [vmem:[%s4787_s0 + $0x690] sm:$0xff] }
  0x47   :  { %2756 = vmatmul.msk.f32.gmra.mxu2 %vm301_vm1, %v172_v36  ;;  %2822 = vmatmul.msk.f32.gmra.mxu3 %vm301_vm1, %v238_v37 }
  0x4e   :  { %2632 = vmatmul.msk.f32.gmra.mxu0 %vm301_vm1, %v48_v38  ;;  %2700 = vmatmul.msk.f32.gmra.mxu1 %vm301_vm1, %v116_v39 }
  0x4f   :  { %2757 = vmatmul.msk.f32.gmra.mxu2 %vm301_vm1, %v173_v40  ;;  %2823 = vmatmul.msk.f32.gmra.mxu3 %vm301_vm1, %v239_v41 }
  0x56   :  { %2633 = vmatmul.msk.f32.gmra.mxu0 %vm301_vm1, %v49_v42  ;;  %2701 = vmatmul.msk.f32.gmra.mxu1 %vm301_vm1, %v117_v43  ;;  %v59_v43 = vld [vmem:[%s4787_s0 + $0xa0] sm:$0xff] }
  0x57   :  { %2758 = vmatmul.msk.f32.gmra.mxu2 %vm301_vm1, %v174_v44  ;;  %2824 = vmatmul.msk.f32.gmra.mxu3 %vm301_vm1, %v240_v45  ;;  %v127_v44 = vld [vmem:[%s4787_s0 + $0x2c0] sm:$0xff]  ;;  %v184_v45 = vld [vmem:[%s4787_s0 + $0x488] sm:$0xff] }
  0x5e   :  { %2634 = vmatmul.msk.f32.gmra.mxu0 %vm301_vm1, %v50_v46  ;;  %2702 = vmatmul.msk.f32.gmra.mxu1 %vm301_vm1, %v118_v47  ;;  %v250_v46 = vld [vmem:[%s4787_s0 + $0x698] sm:$0xff] }
  0x5f   :  { %2759 = vmatmul.msk.f32.gmra.mxu2 %vm301_vm1, %v175_v48  ;;  %2825 = vmatmul.msk.f32.gmra.mxu3 %vm301_vm1, %v241_v49 }
  0x66   :  { %2635 = vmatmul.msk.f32.gmra.mxu0 %vm301_vm1, %v51_v50  ;;  %2703 = vmatmul.msk.f32.gmra.mxu1 %vm301_vm1, %v119_v51 }
  0x67   :  { %2760 = vmatmul.msk.f32.gmra.mxu2 %vm301_vm1, %v176_v52  ;;  %2826 = vmatmul.msk.f32.gmra.mxu3 %vm301_vm1, %v242_v53 }
  0x6e   :  { %2636 = vmatmul.msk.f32.gmra.mxu0 %vm301_vm1, %v52_v54  ;;  %2704 = vmatmul.msk.f32.gmra.mxu1 %vm301_vm1, %v120_v55 }
  0x6f   :  { %2761 = vmatmul.msk.f32.gmra.mxu2 %vm301_vm1, %v177_v56  ;;  %2827 = vmatmul.msk.f32.gmra.mxu3 %vm301_vm1, %v243_v57  ;;  %v60_v57 = vld [vmem:[%s4787_s0 + $0xa8] sm:$0xff] }
  0x76   :  { %2637 = vmatmul.msk.f32.gmra.mxu0 %vm301_vm1, %v53_v58  ;;  %2705 = vmatmul.msk.f32.gmra.mxu1 %vm301_vm1, %v121_v59  ;;  %v128_v58 = vld [vmem:[%s4787_s0 + $0x2c8] sm:$0xff]  ;;  %v185_v59 = vld [vmem:[%s4787_s0 + $0x490] sm:$0xff] }
  0x77   :  { %2762 = vmatmul.msk.f32.gmra.mxu2 %vm301_vm1, %v178_v60  ;;  %2828 = vmatmul.msk.f32.gmra.mxu3 %vm301_vm1, %v244_v61  ;;  %v251_v60 = vld [vmem:[%s4787_s0 + $0x6a0] sm:$0xff] }
  0x7e   :  { %2638 = vmatmul.msk.f32.gmra.mxu0 %vm301_vm1, %v54_v62  ;;  %2706 = vmatmul.msk.f32.gmra.mxu1 %vm301_vm1, %v122_v63 }
  0x7f   :  { %2763 = vmatmul.msk.f32.gmra.mxu2 %vm301_vm1, %v179_v0  ;;  %2829 = vmatmul.msk.f32.gmra.mxu3 %vm301_vm1, %v245_v1 }
  0x83   :  { %v3242_v2 = vpop.f32.mrf.mxu0  ;;  %v3244_v3 = vpop.f32.mrf.mxu1 }
  0x86   :  { %2639 = vmatmul.msk.f32.gmra.mxu0 %vm301_vm1, %v55_v4  ;;  %2707 = vmatmul.msk.f32.gmra.mxu1 %vm301_vm1, %v123_v5 }
  0x87   :  { %2764 = vmatmul.msk.f32.gmra.mxu2 %vm301_vm1, %v180_v6  ;;  %2830 = vmatmul.msk.f32.gmra.mxu3 %vm301_vm1, %v246_v7 }
  0x8a   :  { %v3262_v8 = vpop.f32.mrf.mxu2  ;;  %v3264_v9 = vpop.f32.mrf.mxu3 }
  0x8b   :  { %v3266_v10 = vpop.f32.mrf.mxu0  ;;  %v3268_v11 = vpop.f32.mrf.mxu1 }
  0x8e   :  { %2640 = vmatmul.msk.f32.gmra.mxu0 %vm301_vm1, %v56_v12  ;;  %2708 = vmatmul.msk.f32.gmra.mxu1 %vm301_vm1, %v124_v13  ;;  %v61_v13 = vld [vmem:[%s4787_s0 + $0xb0] sm:$0xff] }
  0x8f   :  { %2765 = vmatmul.msk.f32.gmra.mxu2 %vm301_vm1, %v181_v14  ;;  %2831 = vmatmul.msk.f32.gmra.mxu3 %vm301_vm1, %v247_v15  ;;  %v129_v14 = vld [vmem:[%s4787_s0 + $0x2d0] sm:$0xff]  ;;  %v186_v15 = vld [vmem:[%s4787_s0 + $0x498] sm:$0xff] }
  0x92   :  { %v3286_v16 = vpop.f32.mrf.mxu2  ;;  %v1667_v17 = vpop.f32.mrf.mxu3 }
  0x93   :  { %v3288_v18 = vpop.f32.mrf.mxu0  ;;  %v3290_v19 = vpop.f32.mrf.mxu1  ;;  %v1668_v25 = vadd.f32 %v3307_v24, %v1667_v17  ;;  %v252_v17 = vld [vmem:[%s4787_s0 + $0x6a8] sm:$0xff] }
  0x95   :  { %v2051_v28 = vmax.f32 %v1668_v25, 0.0 }
  0x96   :  { %2641 = vmatmul.msk.f32.gmra.mxu0 %vm301_vm1, %v57_v20  ;;  %2709 = vmatmul.msk.f32.gmra.mxu1 %vm301_vm1, %v125_v21 }
  0x97   :  { %2766 = vmatmul.msk.f32.gmra.mxu2 %vm301_vm1, %v182_v22  ;;  %2832 = vmatmul.msk.f32.gmra.mxu3 %vm301_vm1, %v248_v23 }
  0x9a   :  { %v3314_v26 = vpop.f32.mrf.mxu2  ;;  %v1670_v27 = vpop.f32.mrf.mxu3 }
  0x9b   :  { %v1671_v29 = vadd.f32 %v3307_v24, %v1670_v27  ;;  %v3317_v30 = vpop.f32.mrf.mxu0  ;;  %v3319_v31 = vpop.f32.mrf.mxu1 }
  0x9d   :  { %v2052_v36 = vmax.f32 %v1671_v29, 0.0 }
  0x9e   :  { %2642 = vmatmul.msk.f32.gmra.mxu0 %vm301_vm1, %v58_v32  ;;  %2710 = vmatmul.msk.f32.gmra.mxu1 %vm301_vm1, %v126_v33 }
  0x9f   :  { %v2337_v37 = vadd.f32 %v2052_v36, %v2051_v28  ;;  %2767 = vmatmul.msk.f32.gmra.mxu2 %vm301_vm1, %v183_v34  ;;  %2833 = vmatmul.msk.f32.gmra.mxu3 %vm301_vm1, %v249_v35  ;;  %v62_v34 = vld [vmem:[%s4787_s0 + $0xb8] sm:$0xff]  ;;  %v187_v36 = vld [vmem:[%s4787_s0 + $0x4a0] sm:$0xff] }
  0xa0   :  { %v130_v35 = vld [vmem:[%s4787_s0 + $0x2d8] sm:$0xff] }
  0xa2   :  { %v1475_v38 = vpop.f32.mrf.mxu2  ;;  %v1673_v39 = vpop.f32.mrf.mxu3 }
  0xa3   :  { %v1674_v40 = vadd.f32 %v3307_v24, %v1673_v39  ;;  %v3338_v41 = vpop.f32.mrf.mxu0  ;;  %v3340_v42 = vpop.f32.mrf.mxu1  ;;  %v1476_v48 = vadd.f32 %v3307_v24, %v1475_v38 }
  0xa5   :  { %v2053_v47 = vmax.f32 %v1674_v40, 0.0  ;;  %v1987_v52 = vmax.f32 %v1476_v48, 0.0 }
  0xa6   :  { %2643 = vmatmul.msk.f32.gmra.mxu0 %vm301_vm1, %v59_v43  ;;  %2711 = vmatmul.msk.f32.gmra.mxu1 %vm301_vm1, %v127_v44 }
  0xa7   :  { %v2338_v49 = vadd.f32 %v2337_v37, %v2053_v47  ;;  %2768 = vmatmul.msk.f32.gmra.mxu2 %vm301_vm1, %v184_v45  ;;  %2834 = vmatmul.msk.f32.gmra.mxu3 %vm301_vm1, %v250_v46  ;;  %v253_v37 = vld [vmem:[%s4787_s0 + $0x6b0] sm:$0xff] }
  0xaa   :  { %v1478_v50 = vpop.f32.mrf.mxu2  ;;  %v1676_v51 = vpop.f32.mrf.mxu3 }
  0xab   :  { %v1479_v53 = vadd.f32 %v3307_v24, %v1478_v50  ;;  %v1677_v54 = vadd.f32 %v3307_v24, %v1676_v51  ;;  %v3361_v55 = vpop.f32.mrf.mxu0  ;;  %v3363_v56 = vpop.f32.mrf.mxu1  ;;  %v63_v50 = vld [vmem:[%s4787_s0 + $0xc0] sm:$0xff] }
  0xac   :  { %v131_v51 = vld [vmem:[%s4787_s0 + $0x2e0] sm:$0xff] }
  0xad   :  { %v1988_v61 = vmax.f32 %v1479_v53, 0.0  ;;  %v2054_v62 = vmax.f32 %v1677_v54, 0.0  ;;  %v254_v53 = vld [vmem:[%s4787_s0 + $0x6b8] sm:$0xff] }
  0xae   :  { %2644 = vmatmul.msk.f32.gmra.mxu0 %vm301_vm1, %v60_v57  ;;  %2712 = vmatmul.msk.f32.gmra.mxu1 %vm301_vm1, %v128_v58 }
  0xaf   :  { %v2263_v63 = vadd.f32 %v1988_v61, %v1987_v52  ;;  %v2339_v0 = vadd.f32 %v2338_v49, %v2054_v62  ;;  %2769 = vmatmul.msk.f32.gmra.mxu2 %vm301_vm1, %v185_v59  ;;  %2835 = vmatmul.msk.f32.gmra.mxu3 %vm301_vm1, %v251_v60  ;;  %v188_v52 = vld [vmem:[%s4787_s0 + $0x4a8] sm:$0xff] }
  0xb2   :  { %v1481_v1 = vpop.f32.mrf.mxu2  ;;  %v1679_v4 = vpop.f32.mrf.mxu3 }
  0xb3   :  { %v1482_v5 = vadd.f32 %v3307_v24, %v1481_v1  ;;  %v1680_v6 = vadd.f32 %v3307_v24, %v1679_v4  ;;  %v3383_v7 = vpop.f32.mrf.mxu0  ;;  %v3385_v12 = vpop.f32.mrf.mxu1  ;;  %v64_v4 = vld [vmem:[%s4787_s0 + $0xc8] sm:$0xff] }
  0xb5   :  { %v1989_v20 = vmax.f32 %v1482_v5, 0.0  ;;  %v2055_v21 = vmax.f32 %v1680_v6, 0.0  ;;  %v132_v5 = vld [vmem:[%s4787_s0 + $0x2e8] sm:$0xff]  ;;  %v189_v6 = vld [vmem:[%s4787_s0 + $0x4b0] sm:$0xff] }
  0xb6   :  { %2645 = vmatmul.msk.f32.gmra.mxu0 %vm301_vm1, %v61_v13  ;;  %2713 = vmatmul.msk.f32.gmra.mxu1 %vm301_vm1, %v129_v14  ;;  %v255_v13 = vld [vmem:[%s4787_s0 + $0x6c0] sm:$0xff] }
  0xb7   :  { %v2264_v22 = vadd.f32 %v2263_v63, %v1989_v20  ;;  %v2340_v23 = vadd.f32 %v2339_v0, %v2055_v21  ;;  %2770 = vmatmul.msk.f32.gmra.mxu2 %vm301_vm1, %v186_v15  ;;  %2836 = vmatmul.msk.f32.gmra.mxu3 %vm301_vm1, %v252_v17 }
  0xba   :  { %v1484_v25 = vpop.f32.mrf.mxu2  ;;  %v1682_v27 = vpop.f32.mrf.mxu3 }
  0xbb   :  { %v1485_v28 = vadd.f32 %v3307_v24, %v1484_v25  ;;  %v1683_v29 = vadd.f32 %v3307_v24, %v1682_v27  ;;  %v3405_v32 = vpop.f32.mrf.mxu0  ;;  %v3407_v33 = vpop.f32.mrf.mxu1 }
  0xbd   :  { %v1990_v38 = vmax.f32 %v1485_v28, 0.0  ;;  %v2056_v39 = vmax.f32 %v1683_v29, 0.0  ;;  %v65_v29 = vld [vmem:[%s4787_s0 + $0xd0] sm:$0xff] }
  0xbe   :  { %2646 = vmatmul.msk.f32.gmra.mxu0 %vm301_vm1, %v62_v34  ;;  %2714 = vmatmul.msk.f32.gmra.mxu1 %vm301_vm1, %v130_v35  ;;  %v133_v34 = vld [vmem:[%s4787_s0 + $0x2f0] sm:$0xff]  ;;  %v190_v35 = vld [vmem:[%s4787_s0 + $0x4b8] sm:$0xff] }
  0xbf   :  { %v2265_v40 = vadd.f32 %v2264_v22, %v1990_v38  ;;  %v2341_v43 = vadd.f32 %v2340_v23, %v2056_v39  ;;  %2771 = vmatmul.msk.f32.gmra.mxu2 %vm301_vm1, %v187_v36  ;;  %2837 = vmatmul.msk.f32.gmra.mxu3 %vm301_vm1, %v253_v37  ;;  %v256_v36 = vld [vmem:[%s4787_s0 + $0x6c8] sm:$0xff] }
  0xc2   :  { %v1487_v44 = vpop.f32.mrf.mxu2  ;;  %v1685_v45 = vpop.f32.mrf.mxu3 }
  0xc3   :  { %v1488_v46 = vadd.f32 %v3307_v24, %v1487_v44  ;;  %v1686_v47 = vadd.f32 %v3307_v24, %v1685_v45  ;;  %v3427_v48 = vpop.f32.mrf.mxu0  ;;  %v3429_v49 = vpop.f32.mrf.mxu1 }
  0xc4   :  { %4801 = vst [vmem:[#allocation5_spill] sm:$0xff] %v3429_v49 }
  0xc5   :  { %v1991_v54 = vmax.f32 %v1488_v46, 0.0  ;;  %v2057_v57 = vmax.f32 %v1686_v47, 0.0 }
  0xc6   :  { %2647 = vmatmul.msk.f32.gmra.mxu0 %vm301_vm1, %v63_v50  ;;  %2715 = vmatmul.msk.f32.gmra.mxu1 %vm301_vm1, %v131_v51  ;;  %v66_v51 = vld [vmem:[%s4787_s0 + $0xd8] sm:$0xff] }
  0xc7   :  { %v2266_v58 = vadd.f32 %v2265_v40, %v1991_v54  ;;  %v2342_v59 = vadd.f32 %v2341_v43, %v2057_v57  ;;  %2772 = vmatmul.msk.f32.gmra.mxu2 %vm301_vm1, %v188_v52  ;;  %2838 = vmatmul.msk.f32.gmra.mxu3 %vm301_vm1, %v254_v53  ;;  %v134_v52 = vld [vmem:[%s4787_s0 + $0x2f8] sm:$0xff]  ;;  %v191_v53 = vld [vmem:[%s4787_s0 + $0x4c0] sm:$0xff]  ;;  %v257_v54 = vld [vmem:[%s4787_s0 + $0x6d0] sm:$0xff] }
  0xca   :  { %v1490_v60 = vpop.f32.mrf.mxu2  ;;  %v1688_v61 = vpop.f32.mrf.mxu3 }
  0xcb   :  { %v1491_v62 = vadd.f32 %v3307_v24, %v1490_v60  ;;  %v1689_v63 = vadd.f32 %v3307_v24, %v1688_v61  ;;  %v3449_v0 = vpop.f32.mrf.mxu0  ;;  %v3451_v1 = vpop.f32.mrf.mxu1 }
  0xcc   :  { %4802 = vst [vmem:[#allocation6_spill] sm:$0xff] %v3451_v1 }
  0xcd   :  { %v1992_v14 = vmax.f32 %v1491_v62, 0.0  ;;  %v2058_v15 = vmax.f32 %v1689_v63, 0.0 }
  0xce   :  { %2648 = vmatmul.msk.f32.gmra.mxu0 %vm301_vm1, %v64_v4  ;;  %2716 = vmatmul.msk.f32.gmra.mxu1 %vm301_vm1, %v132_v5 }
  0xcf   :  { %v2267_v17 = vadd.f32 %v2266_v58, %v1992_v14  ;;  %v2343_v20 = vadd.f32 %v2342_v59, %v2058_v15  ;;  %2773 = vmatmul.msk.f32.gmra.mxu2 %vm301_vm1, %v189_v6  ;;  %2839 = vmatmul.msk.f32.gmra.mxu3 %vm301_vm1, %v255_v13  ;;  %v67_v13 = vld [vmem:[%s4787_s0 + $0xe0] sm:$0xff]  ;;  %v192_v15 = vld [vmem:[%s4787_s0 + $0x4c8] sm:$0xff] }
  0xd0   :  { %v135_v14 = vld [vmem:[%s4787_s0 + $0x300] sm:$0xff] }
  0xd2   :  { %v1493_v21 = vpop.f32.mrf.mxu2  ;;  %v1691_v22 = vpop.f32.mrf.mxu3 }
  0xd3   :  { %v1494_v23 = vadd.f32 %v3307_v24, %v1493_v21  ;;  %v1692_v25 = vadd.f32 %v3307_v24, %v1691_v22  ;;  %v3471_v27 = vpop.f32.mrf.mxu0  ;;  %v3473_v28 = vpop.f32.mrf.mxu1 }
  0xd4   :  { %4803 = vst [vmem:[#allocation7_spill] sm:$0xff] %v3473_v28 }
  0xd5   :  { %v1993_v37 = vmax.f32 %v1494_v23, 0.0  ;;  %v2059_v38 = vmax.f32 %v1692_v25, 0.0 }
  0xd6   :  { %2649 = vmatmul.msk.f32.gmra.mxu0 %vm301_vm1, %v65_v29  ;;  %2717 = vmatmul.msk.f32.gmra.mxu1 %vm301_vm1, %v133_v34 }
  0xd7   :  { %v2268_v39 = vadd.f32 %v2267_v17, %v1993_v37  ;;  %v2344_v40 = vadd.f32 %v2343_v20, %v2059_v38  ;;  %2774 = vmatmul.msk.f32.gmra.mxu2 %vm301_vm1, %v190_v35  ;;  %2840 = vmatmul.msk.f32.gmra.mxu3 %vm301_vm1, %v256_v36  ;;  %v258_v17 = vld [vmem:[%s4787_s0 + $0x6d8] sm:$0xff]  ;;  %v68_v38 = vld [vmem:[%s4787_s0 + $0xe8] sm:$0xff] }
  0xda   :  { %v1496_v43 = vpop.f32.mrf.mxu2  ;;  %v1694_v44 = vpop.f32.mrf.mxu3 }
  0xdb   :  { %v1497_v45 = vadd.f32 %v3307_v24, %v1496_v43  ;;  %v1695_v46 = vadd.f32 %v3307_v24, %v1694_v44  ;;  %v3493_v47 = vpop.f32.mrf.mxu0  ;;  %v3495_v50 = vpop.f32.mrf.mxu1  ;;  %v259_v43 = vld [vmem:[%s4787_s0 + $0x6e0] sm:$0xff] }
  0xdc   :  { %4804 = vst [vmem:[#allocation8_spill] sm:$0xff] %v3495_v50 }
  0xdd   :  { %v1994_v57 = vmax.f32 %v1497_v45, 0.0  ;;  %v2060_v58 = vmax.f32 %v1695_v46, 0.0 }
  0xde   :  { %2650 = vmatmul.msk.f32.gmra.mxu0 %vm301_vm1, %v66_v51  ;;  %2718 = vmatmul.msk.f32.gmra.mxu1 %vm301_vm1, %v134_v52 }
  0xdf   :  { %v2269_v59 = vadd.f32 %v2268_v39, %v1994_v57  ;;  %v2345_v60 = vadd.f32 %v2344_v40, %v2060_v58  ;;  %2775 = vmatmul.msk.f32.gmra.mxu2 %vm301_vm1, %v191_v53  ;;  %2841 = vmatmul.msk.f32.gmra.mxu3 %vm301_vm1, %v257_v54  ;;  %v136_v39 = vld [vmem:[%s4787_s0 + $0x308] sm:$0xff]  ;;  %v193_v40 = vld [vmem:[%s4787_s0 + $0x4d0] sm:$0xff] }
  0xe2   :  { %v1499_v61 = vpop.f32.mrf.mxu2  ;;  %v1697_v62 = vpop.f32.mrf.mxu3 }
  0xe3   :  { %v1500_v63 = vadd.f32 %v3307_v24, %v1499_v61  ;;  %v1698_v4 = vadd.f32 %v3307_v24, %v1697_v62  ;;  %v3515_v5 = vpop.f32.mrf.mxu0  ;;  %v3517_v6 = vpop.f32.mrf.mxu1  ;;  %v137_v61 = vld [vmem:[%s4787_s0 + $0x310] sm:$0xff]  ;;  %v194_v62 = vld [vmem:[%s4787_s0 + $0x4d8] sm:$0xff] }
  0xe4   :  { %4805 = vst [vmem:[#allocation9_spill] sm:$0xff] %v3517_v6 }
  0xe5   :  { %v1995_v20 = vmax.f32 %v1500_v63, 0.0  ;;  %v2061_v21 = vmax.f32 %v1698_v4, 0.0  ;;  %v260_v63 = vld [vmem:[%s4787_s0 + $0x6e8] sm:$0xff] }
  0xe6   :  { %2651 = vmatmul.msk.f32.gmra.mxu0 %vm301_vm1, %v67_v13  ;;  %2719 = vmatmul.msk.f32.gmra.mxu1 %vm301_vm1, %v135_v14 }
  0xe7   :  { %v2270_v22 = vadd.f32 %v2269_v59, %v1995_v20  ;;  %v2346_v23 = vadd.f32 %v2345_v60, %v2061_v21  ;;  %2776 = vmatmul.msk.f32.gmra.mxu2 %vm301_vm1, %v192_v15  ;;  %2842 = vmatmul.msk.f32.gmra.mxu3 %vm301_vm1, %v258_v17  ;;  %v69_v60 = vld [vmem:[%s4787_s0 + $0xf0] sm:$0xff] }
  0xea   :  { %v1502_v25 = vpop.f32.mrf.mxu2  ;;  %v1700_v29 = vpop.f32.mrf.mxu3 }
  0xeb   :  { %v1503_v34 = vadd.f32 %v3307_v24, %v1502_v25  ;;  %v1701_v35 = vadd.f32 %v3307_v24, %v1700_v29  ;;  %v3537_v36 = vpop.f32.mrf.mxu0  ;;  %v3539_v37 = vpop.f32.mrf.mxu1  ;;  %v70_v29 = vld [vmem:[%s4787_s0 + $0xf8] sm:$0xff] }
  0xec   :  { %4806 = vst [vmem:[#allocation10_spill] sm:$0xff] %v3539_v37 }
  0xed   :  { %v1996_v44 = vmax.f32 %v1503_v34, 0.0  ;;  %v2062_v45 = vmax.f32 %v1701_v35, 0.0  ;;  %v138_v34 = vld [vmem:[%s4787_s0 + $0x318] sm:$0xff]  ;;  %v195_v35 = vld [vmem:[%s4787_s0 + $0x4e0] sm:$0xff] }
  0xee   :  { %2652 = vmatmul.msk.f32.gmra.mxu0 %vm301_vm1, %v68_v38  ;;  %2720 = vmatmul.msk.f32.gmra.mxu1 %vm301_vm1, %v136_v39  ;;  %v261_v38 = vld [vmem:[%s4787_s0 + $0x6f0] sm:$0xff] }
  0xef   :  { %v2271_v46 = vadd.f32 %v2270_v22, %v1996_v44  ;;  %v2347_v51 = vadd.f32 %v2346_v23, %v2062_v45  ;;  %2777 = vmatmul.msk.f32.gmra.mxu2 %vm301_vm1, %v193_v40  ;;  %2843 = vmatmul.msk.f32.gmra.mxu3 %vm301_vm1, %v259_v43 }
  0xf2   :  { %v1505_v52 = vpop.f32.mrf.mxu2  ;;  %v1703_v53 = vpop.f32.mrf.mxu3 }
  0xf3   :  { %v1506_v54 = vadd.f32 %v3307_v24, %v1505_v52  ;;  %v1704_v57 = vadd.f32 %v3307_v24, %v1703_v53  ;;  %v3559_v58 = vpop.f32.mrf.mxu0  ;;  %v3561_v59 = vpop.f32.mrf.mxu1 }
  0xf4   :  { %4807 = vst [vmem:[#allocation11_spill] sm:$0xff] %v3561_v59 }
  0xf5   :  { %v1997_v4 = vmax.f32 %v1506_v54, 0.0  ;;  %v2063_v13 = vmax.f32 %v1704_v57, 0.0  ;;  %v71_v57 = vld [vmem:[%s4787_s0 + $0x100] sm:$0xff] }
  0xf6   :  { %2653 = vmatmul.msk.f32.gmra.mxu0 %vm301_vm1, %v69_v60  ;;  %2721 = vmatmul.msk.f32.gmra.mxu1 %vm301_vm1, %v137_v61  ;;  %v139_v60 = vld [vmem:[%s4787_s0 + $0x320] sm:$0xff]  ;;  %v196_v61 = vld [vmem:[%s4787_s0 + $0x4e8] sm:$0xff] }
  0xf7   :  { %v2272_v14 = vadd.f32 %v2271_v46, %v1997_v4  ;;  %v2348_v15 = vadd.f32 %v2347_v51, %v2063_v13  ;;  %2778 = vmatmul.msk.f32.gmra.mxu2 %vm301_vm1, %v194_v62  ;;  %2844 = vmatmul.msk.f32.gmra.mxu3 %vm301_vm1, %v260_v63  ;;  %v262_v62 = vld [vmem:[%s4787_s0 + $0x6f8] sm:$0xff] }
  0xfa   :  { %v1508_v17 = vpop.f32.mrf.mxu2  ;;  %v1706_v20 = vpop.f32.mrf.mxu3 }
  0xfb   :  { %v1509_v21 = vadd.f32 %v3307_v24, %v1508_v17  ;;  %v1707_v22 = vadd.f32 %v3307_v24, %v1706_v20  ;;  %v3581_v23 = vpop.f32.mrf.mxu0  ;;  %v3583_v25 = vpop.f32.mrf.mxu1 }
  0xfc   :  { %4808 = vst [vmem:[#allocation12_spill] sm:$0xff] %v3583_v25 }
  0xfd   :  { %v1998_v39 = vmax.f32 %v1509_v21, 0.0  ;;  %v2064_v40 = vmax.f32 %v1707_v22, 0.0 }
  0xfe   :  { %2654 = vmatmul.msk.f32.gmra.mxu0 %vm301_vm1, %v70_v29  ;;  %2722 = vmatmul.msk.f32.gmra.mxu1 %vm301_vm1, %v138_v34 }
  0xff   :  { %v2273_v43 = vadd.f32 %v2272_v14, %v1998_v39  ;;  %v2349_v44 = vadd.f32 %v2348_v15, %v2064_v40  ;;  %2779 = vmatmul.msk.f32.gmra.mxu2 %vm301_vm1, %v195_v35  ;;  %2845 = vmatmul.msk.f32.gmra.mxu3 %vm301_vm1, %v261_v38  ;;  %v2434_v15 = vld [vmem:[%s4790_s3 + $0x78] sm:$0xff]  ;;  %v72_v35 = vld [vmem:[%s4787_s0 + $0x108] sm:$0xff]  ;;  %v197_v39 = vld [vmem:[%s4787_s0 + $0x4f0] sm:$0xff] }
 0x100   :  { %2462 = vmatpush.msrb.mxu1 %v2434_v15  ;;  %v140_v38 = vld [vmem:[%s4787_s0 + $0x328] sm:$0xff]  ;;  %v263_v40 = vld [vmem:[%s4787_s0 + $0x700] sm:$0xff] }
 0x102   :  { %v1511_v45 = vpop.f32.mrf.mxu2  ;;  %v1709_v46 = vpop.f32.mrf.mxu3 }
 0x103   :  { %v1512_v51 = vadd.f32 %v3307_v24, %v1511_v45  ;;  %v1710_v52 = vadd.f32 %v3307_v24, %v1709_v46  ;;  %v3603_v53 = vpop.f32.mrf.mxu0  ;;  %v3605_v54 = vpop.f32.mrf.mxu1 }
 0x104   :  { %4809 = vst [vmem:[#allocation13_spill] sm:$0xff] %v3605_v54 }
 0x105   :  { %v1999_v63 = vmax.f32 %v1512_v51, 0.0  ;;  %v2065_v4 = vmax.f32 %v1710_v52, 0.0 }
 0x106   :  { %2655 = vmatmul.msk.f32.gmra.mxu0 %vm301_vm1, %v71_v57  ;;  %2723 = vmatmul.msk.f32.gmra.mxu1 %vm301_vm1, %v139_v60 }
 0x107   :  { %v2274_v13 = vadd.f32 %v2273_v43, %v1999_v63  ;;  %v2350_v14 = vadd.f32 %v2349_v44, %v2065_v4  ;;  %2780 = vmatmul.msk.f32.gmra.mxu2 %vm301_vm1, %v196_v61  ;;  %2846 = vmatmul.msk.f32.gmra.mxu3 %vm301_vm1, %v262_v62  ;;  %v73_v63 = vld [vmem:[%s4787_s0 + $0x110] sm:$0xff] }
 0x108   :  { %v141_v4 = vld [vmem:[%s4787_s0 + $0x330] sm:$0xff] }
 0x10a   :  { %v1514_v17 = vpop.f32.mrf.mxu2  ;;  %v1712_v20 = vpop.f32.mrf.mxu3 }
 0x10b   :  { %v1515_v21 = vadd.f32 %v3307_v24, %v1514_v17  ;;  %v1713_v22 = vadd.f32 %v3307_v24, %v1712_v20  ;;  %v3628_v29 = vpop.f32.mrf.mxu0  ;;  %v3630_v34 = vpop.f32.mrf.mxu1 }
 0x10c   :  { %4810 = vst [vmem:[#allocation14_spill] sm:$0xff] %v3630_v34 }
 0x10d   :  { %v2000_v43 = vmax.f32 %v1515_v21, 0.0  ;;  %v2066_v44 = vmax.f32 %v1713_v22, 0.0 }
 0x10e   :  { %2656 = vmatmul.msk.f32.gmra.mxu0 %vm301_vm1, %v72_v35  ;;  %2724 = vmatmul.msk.f32.gmra.mxu1 %vm301_vm1, %v140_v38 }
 0x10f   :  { %v2275_v45 = vadd.f32 %v2274_v13, %v2000_v43  ;;  %v2351_v46 = vadd.f32 %v2350_v14, %v2066_v44  ;;  %2781 = vmatmul.msk.f32.gmra.mxu2 %vm301_vm1, %v197_v39  ;;  %2847 = vmatmul.msk.f32.gmra.mxu3 %vm301_vm1, %v263_v40  ;;  %v198_v13 = vld [vmem:[%s4787_s0 + $0x4f8] sm:$0xff]  ;;  %v264_v14 = vld [vmem:[%s4787_s0 + $0x708] sm:$0xff] }
 0x110   :  { %v74_v44 = vld [vmem:[%s4787_s0 + $0x118] sm:$0xff] }
 0x112   :  { %v1517_v51 = vpop.f32.mrf.mxu2  ;;  %v1715_v52 = vpop.f32.mrf.mxu3 }
 0x113   :  { %v1518_v57 = vadd.f32 %v3307_v24, %v1517_v51  ;;  %v1716_v60 = vadd.f32 %v3307_v24, %v1715_v52  ;;  %v3650_v61 = vpop.f32.mrf.mxu0  ;;  %v3652_v62 = vpop.f32.mrf.mxu1  ;;  %v265_v51 = vld [vmem:[%s4787_s0 + $0x710] sm:$0xff] }
 0x114   :  { %4811 = vst [vmem:[#allocation15_spill] sm:$0xff] %v3652_v62 }
 0x115   :  { %v2001_v15 = vmax.f32 %v1518_v57, 0.0  ;;  %v2067_v17 = vmax.f32 %v1716_v60, 0.0 }
 0x116   :  { %2657 = vmatmul.msk.f32.gmra.mxu0 %vm301_vm1, %v73_v63  ;;  %2725 = vmatmul.msk.f32.gmra.mxu1 %vm301_vm1, %v141_v4 }
 0x117   :  { %v2276_v20 = vadd.f32 %v2275_v45, %v2001_v15  ;;  %v2352_v21 = vadd.f32 %v2351_v46, %v2067_v17  ;;  %2782 = vmatmul.msk.f32.gmra.mxu2 %vm301_vm1, %v198_v13  ;;  %2848 = vmatmul.msk.f32.gmra.mxu3 %vm301_vm1, %v264_v14  ;;  %v142_v45 = vld [vmem:[%s4787_s0 + $0x338] sm:$0xff]  ;;  %v199_v46 = vld [vmem:[%s4787_s0 + $0x500] sm:$0xff] }
 0x11a   :  { %v1520_v22 = vpop.f32.mrf.mxu2  ;;  %v1718_v35 = vpop.f32.mrf.mxu3 }
 0x11b   :  { %v1521_v38 = vadd.f32 %v3307_v24, %v1520_v22  ;;  %v1719_v39 = vadd.f32 %v3307_v24, %v1718_v35  ;;  %v3672_v40 = vpop.f32.mrf.mxu0  ;;  %v3674_v43 = vpop.f32.mrf.mxu1  ;;  %v75_v35 = vld [vmem:[%s4787_s0 + $0x120] sm:$0xff] }
 0x11c   :  { %4812 = vst [vmem:[#allocation16_spill] sm:$0xff] %v3674_v43 }
 0x11d   :  { %v2002_v52 = vmax.f32 %v1521_v38, 0.0  ;;  %v2068_v57 = vmax.f32 %v1719_v39, 0.0  ;;  %v266_v38 = vld [vmem:[%s4787_s0 + $0x718] sm:$0xff] }
 0x11e   :  { %2658 = vmatmul.msk.f32.gmra.mxu0 %vm301_vm1, %v74_v44  ;;  %2726 = vmatmul.msk.f32.gmra.mxu1 %vm301_vm1, %v142_v45 }
 0x11f   :  { %v2277_v60 = vadd.f32 %v2276_v20, %v2002_v52  ;;  %v2353_v63 = vadd.f32 %v2352_v21, %v2068_v57  ;;  %2783 = vmatmul.msk.f32.gmra.mxu2 %vm301_vm1, %v199_v46  ;;  %2849 = vmatmul.msk.f32.gmra.mxu3 %vm301_vm1, %v265_v51  ;;  %v143_v20 = vld [vmem:[%s4787_s0 + $0x340] sm:$0xff]  ;;  %v200_v21 = vld [vmem:[%s4787_s0 + $0x508] sm:$0xff]  ;;  %v2433_v51 = vld [vmem:[%s4790_s3 + $0x70] sm:$0xff] }
 0x120   :  { %2463 = vmatpush.msrb.mxu1 %v2433_v51 }
 0x122   :  { %v1523_v4 = vpop.f32.mrf.mxu2  ;;  %v1721_v13 = vpop.f32.mrf.mxu3 }
 0x123   :  { %v1524_v14 = vadd.f32 %v3307_v24, %v1523_v4  ;;  %v1722_v15 = vadd.f32 %v3307_v24, %v1721_v13  ;;  %v3694_v17 = vpop.f32.mrf.mxu0  ;;  %v3696_v22 = vpop.f32.mrf.mxu1 }
 0x124   :  { %4813 = vst [vmem:[#allocation17_spill] sm:$0xff] %v3694_v17 }
 0x125   :  { %4814 = vst [vmem:[#allocation18_spill] sm:$0xff] %v3696_v22  ;;  %v2003_v39 = vmax.f32 %v1524_v14, 0.0  ;;  %v2069_v44 = vmax.f32 %v1722_v15, 0.0 }
 0x126   :  { %2659 = vmatmul.msk.f32.gmra.mxu0 %vm301_vm1, %v75_v35  ;;  %2727 = vmatmul.msk.f32.gmra.mxu1 %vm301_vm1, %v143_v20  ;;  %v201_v35 = vld [vmem:[%s4787_s0 + $0x510] sm:$0xff]  ;;  %v267_v20 = vld [vmem:[%s4787_s0 + $0x720] sm:$0xff] }
 0x127   :  { %v2278_v45 = vadd.f32 %v2277_v60, %v2003_v39  ;;  %v2354_v46 = vadd.f32 %v2353_v63, %v2069_v44  ;;  %2784 = vmatmul.msk.f32.gmra.mxu2 %vm301_vm1, %v200_v21  ;;  %2850 = vmatmul.msk.f32.gmra.mxu3 %vm301_vm1, %v266_v38  ;;  %v76_v60 = vld [vmem:[%s4787_s0 + $0x128] sm:$0xff] }
 0x128   :  { %v144_v63 = vld [vmem:[%s4787_s0 + $0x348] sm:$0xff] }
 0x12a   :  { %v1526_v52 = vpop.f32.mrf.mxu2  ;;  %v1724_v57 = vpop.f32.mrf.mxu3 }
 0x12b   :  { %v1527_v4 = vadd.f32 %v3307_v24, %v1526_v52  ;;  %v1725_v13 = vadd.f32 %v3307_v24, %v1724_v57  ;;  %v3719_v14 = vpop.f32.mrf.mxu0  ;;  %v3721_v15 = vpop.f32.mrf.mxu1 }
 0x12c   :  { %4815 = vst [vmem:[#allocation19_spill] sm:$0xff] %v3719_v14 }
 0x12d   :  { %4816 = vst [vmem:[#allocation20_spill] sm:$0xff] %v3721_v15  ;;  %v2004_v21 = vmax.f32 %v1527_v4, 0.0  ;;  %v2070_v38 = vmax.f32 %v1725_v13, 0.0  ;;  %v77_v13 = vld [vmem:[%s4787_s0 + $0x130] sm:$0xff] }
 0x12e   :  { %2660 = vmatmul.msk.f32.gmra.mxu0 %vm301_vm1, %v76_v60  ;;  %2728 = vmatmul.msk.f32.gmra.mxu1 %vm301_vm1, %v144_v63  ;;  %v268_v60 = vld [vmem:[%s4787_s0 + $0x728] sm:$0xff] }
 0x12f   :  { %v2279_v39 = vadd.f32 %v2278_v45, %v2004_v21  ;;  %v2355_v44 = vadd.f32 %v2354_v46, %v2070_v38  ;;  %2785 = vmatmul.msk.f32.gmra.mxu2 %vm301_vm1, %v201_v35  ;;  %2851 = vmatmul.msk.f32.gmra.mxu3 %vm301_vm1, %v267_v20  ;;  %v145_v45 = vld [vmem:[%s4787_s0 + $0x350] sm:$0xff]  ;;  %v202_v46 = vld [vmem:[%s4787_s0 + $0x518] sm:$0xff] }
 0x132   :  { %v1529_v51 = vpop.f32.mrf.mxu2  ;;  %v1727_v52 = vpop.f32.mrf.mxu3 }
 0x133   :  { %v1530_v57 = vadd.f32 %v3307_v24, %v1529_v51  ;;  %v1728_v15 = vadd.f32 %v3307_v24, %v1727_v52  ;;  %v3741_v22 = vpop.f32.mrf.mxu0  ;;  %v3743_v4 = vpop.f32.mrf.mxu1 }
 0x134   :  { %4817 = vst [vmem:[#allocation21_spill] sm:$0xff] %v3741_v22 }
 0x135   :  { %4818 = vst [vmem:[#allocation22_spill] sm:$0xff] %v3743_v4  ;;  %v2005_v63 = vmax.f32 %v1530_v57, 0.0  ;;  %v2071_v35 = vmax.f32 %v1728_v15, 0.0  ;;  %v78_v15 = vld [vmem:[%s4787_s0 + $0x138] sm:$0xff] }
 0x136   :  { %2661 = vmatmul.msk.f32.gmra.mxu0 %vm301_vm1, %v77_v13  ;;  %2729 = vmatmul.msk.f32.gmra.mxu1 %vm301_vm1, %v145_v45  ;;  %v269_v13 = vld [vmem:[%s4787_s0 + $0x730] sm:$0xff] }
 0x137   :  { %v2280_v20 = vadd.f32 %v2279_v39, %v2005_v63  ;;  %v2356_v21 = vadd.f32 %v2355_v44, %v2071_v35  ;;  %2786 = vmatmul.msk.f32.gmra.mxu2 %vm301_vm1, %v202_v46  ;;  %2852 = vmatmul.msk.f32.gmra.mxu3 %vm301_vm1, %v268_v60  ;;  %v146_v39 = vld [vmem:[%s4787_s0 + $0x358] sm:$0xff]  ;;  %v203_v44 = vld [vmem:[%s4787_s0 + $0x520] sm:$0xff]  ;;  %v2432_v35 = vld [vmem:[%s4790_s3 + $0x68] sm:$0xff] }
 0x138   :  { %2464 = vmatpush.msrb.mxu1 %v2432_v35 }
 0x13a   :  { %v1532_v38 = vpop.f32.mrf.mxu2  ;;  %v1730_v51 = vpop.f32.mrf.mxu3 }
 0x13b   :  { %v1533_v52 = vadd.f32 %v3307_v24, %v1532_v38  ;;  %v1731_v4 = vadd.f32 %v3307_v24, %v1730_v51  ;;  %v3763_v43 = vpop.f32.mrf.mxu0  ;;  %v3765_v57 = vpop.f32.mrf.mxu1  ;;  %v2498_v38 = vld [vmem:[%s4792_s5 + $0x78] sm:$0xff] }
 0x13c   :  { %4819 = vst [vmem:[#allocation23_spill] sm:$0xff] %v3763_v43  ;;  %2503 = vmatpush.msrb.mxu2 %v2498_v38 }
 0x13d   :  { %4820 = vst [vmem:[#allocation24_spill] sm:$0xff] %v3765_v57  ;;  %v2006_v45 = vmax.f32 %v1533_v52, 0.0  ;;  %v2072_v46 = vmax.f32 %v1731_v4, 0.0 }
 0x13e   :  { %2662 = vmatmul.msk.f32.gmra.mxu0 %vm301_vm1, %v78_v15  ;;  %2730 = vmatmul.msk.f32.gmra.mxu1 %vm301_vm1, %v146_v39  ;;  %v79_v39 = vld [vmem:[%s4787_s0 + $0x140] sm:$0xff] }
 0x13f   :  { %v2281_v60 = vadd.f32 %v2280_v20, %v2006_v45  ;;  %v2357_v63 = vadd.f32 %v2356_v21, %v2072_v46  ;;  %2787 = vmatmul.msk.f32.gmra.mxu2 %vm301_vm1, %v203_v44  ;;  %2853 = vmatmul.msk.f32.gmra.mxu3 %vm301_vm1, %v269_v13  ;;  %v147_v44 = vld [vmem:[%s4787_s0 + $0x360] sm:$0xff]  ;;  %v204_v13 = vld [vmem:[%s4787_s0 + $0x528] sm:$0xff]  ;;  %v270_v45 = vld [vmem:[%s4787_s0 + $0x738] sm:$0xff] }
 0x142   :  { %v1535_v4 = vpop.f32.mrf.mxu2  ;;  %v1733_v51 = vpop.f32.mrf.mxu3 }
 0x143   :  { %v1536_v52 = vadd.f32 %v3307_v24, %v1535_v4  ;;  %v1734_v20 = vadd.f32 %v3307_v24, %v1733_v51  ;;  %v3791_v21 = vpop.f32.mrf.mxu0  ;;  %v3793_v15 = vpop.f32.mrf.mxu1 }
 0x144   :  { %4821 = vst [vmem:[#allocation25_spill] sm:$0xff] %v3791_v21 }
 0x145   :  { %4822 = vst [vmem:[#allocation26_spill] sm:$0xff] %v3793_v15  ;;  %v2007_v46 = vmax.f32 %v1536_v52, 0.0  ;;  %v2073_v35 = vmax.f32 %v1734_v20, 0.0  ;;  %v80_v20 = vld [vmem:[%s4787_s0 + $0x148] sm:$0xff] }
 0x146   :  { %2663 = vmatmul.msk.f32.gmra.mxu0 %vm301_vm1, %v79_v39  ;;  %2731 = vmatmul.msk.f32.gmra.mxu1 %vm301_vm1, %v147_v44 }
 0x147   :  { %v2282_v38 = vadd.f32 %v2281_v60, %v2007_v46  ;;  %v2358_v4 = vadd.f32 %v2357_v63, %v2073_v35  ;;  %2788 = vmatmul.msk.f32.gmra.mxu2 %vm301_vm1, %v204_v13  ;;  %2854 = vmatmul.msk.f32.gmra.mxu3 %vm301_vm1, %v270_v45  ;;  %v148_v60 = vld [vmem:[%s4787_s0 + $0x368] sm:$0xff]  ;;  %v205_v63 = vld [vmem:[%s4787_s0 + $0x530] sm:$0xff] }
 0x14a   :  { %v1538_v51 = vpop.f32.mrf.mxu2  ;;  %v1736_v15 = vpop.f32.mrf.mxu3 }
 0x14b   :  { %v1539_v57 = vadd.f32 %v3307_v24, %v1538_v51  ;;  %v1737_v62 = vadd.f32 %v3307_v24, %v1736_v15  ;;  %v3813_v34 = vpop.f32.mrf.mxu0  ;;  %v3815_v52 = vpop.f32.mrf.mxu1  ;;  %v271_v15 = vld [vmem:[%s4787_s0 + $0x740] sm:$0xff] }
 0x14c   :  { %4823 = vst [vmem:[#allocation27_spill] sm:$0xff] %v3813_v34 }
 0x14d   :  { %4824 = vst [vmem:[#allocation28_spill] sm:$0xff] %v3815_v52  ;;  %v2008_v39 = vmax.f32 %v1539_v57, 0.0  ;;  %v2074_v44 = vmax.f32 %v1737_v62, 0.0  ;;  %v81_v62 = vld [vmem:[%s4787_s0 + $0x150] sm:$0xff] }
 0x14e   :  { %2664 = vmatmul.msk.f32.gmra.mxu0 %vm301_vm1, %v80_v20  ;;  %2732 = vmatmul.msk.f32.gmra.mxu1 %vm301_vm1, %v148_v60  ;;  %v272_v20 = vld [vmem:[%s4787_s0 + $0x748] sm:$0xff] }
 0x14f   :  { %v2283_v13 = vadd.f32 %v2282_v38, %v2008_v39  ;;  %v2359_v45 = vadd.f32 %v2358_v4, %v2074_v44  ;;  %2789 = vmatmul.msk.f32.gmra.mxu2 %vm301_vm1, %v205_v63  ;;  %2855 = vmatmul.msk.f32.gmra.mxu3 %vm301_vm1, %v271_v15  ;;  %v149_v38 = vld [vmem:[%s4787_s0 + $0x370] sm:$0xff]  ;;  %v206_v4 = vld [vmem:[%s4787_s0 + $0x538] sm:$0xff] }
 0x152   :  { %v1541_v46 = vpop.f32.mrf.mxu2  ;;  %v1739_v35 = vpop.f32.mrf.mxu3 }
 0x153   :  { %v1542_v51 = vadd.f32 %v3307_v24, %v1541_v46  ;;  %v1740_v52 = vadd.f32 %v3307_v24, %v1739_v35  ;;  %v3835_v54 = vpop.f32.mrf.mxu0  ;;  %v3837_v57 = vpop.f32.mrf.mxu1 }
 0x154   :  { %4825 = vst [vmem:[#allocation29_spill] sm:$0xff] %v3835_v54 }
 0x155   :  { %4826 = vst [vmem:[#allocation30_spill] sm:$0xff] %v3837_v57  ;;  %v2009_v60 = vmax.f32 %v1542_v51, 0.0  ;;  %v2075_v63 = vmax.f32 %v1740_v52, 0.0  ;;  %v82_v52 = vld [vmem:[%s4787_s0 + $0x158] sm:$0xff] }
 0x156   :  { %2665 = vmatmul.msk.f32.gmra.mxu0 %vm301_vm1, %v81_v62  ;;  %2733 = vmatmul.msk.f32.gmra.mxu1 %vm301_vm1, %v149_v38  ;;  %v273_v62 = vld [vmem:[%s4787_s0 + $0x750] sm:$0xff] }
 0x157   :  { %v2284_v15 = vadd.f32 %v2283_v13, %v2009_v60  ;;  %v2360_v39 = vadd.f32 %v2359_v45, %v2075_v63  ;;  %2790 = vmatmul.msk.f32.gmra.mxu2 %vm301_vm1, %v206_v4  ;;  %2856 = vmatmul.msk.f32.gmra.mxu3 %vm301_vm1, %v272_v20  ;;  %v150_v13 = vld [vmem:[%s4787_s0 + $0x378] sm:$0xff]  ;;  %v207_v45 = vld [vmem:[%s4787_s0 + $0x540] sm:$0xff] }
 0x15a   :  { %v1544_v44 = vpop.f32.mrf.mxu2  ;;  %v1742_v46 = vpop.f32.mrf.mxu3 }
 0x15b   :  { %v1545_v35 = vadd.f32 %v3307_v24, %v1544_v44  ;;  %v1743_v57 = vadd.f32 %v3307_v24, %v1742_v46  ;;  %v3857_v25 = vpop.f32.mrf.mxu0  ;;  %v3859_v51 = vpop.f32.mrf.mxu1 }
 0x15c   :  { %4827 = vst [vmem:[#allocation31_spill] sm:$0xff] %v3857_v25 }
 0x15d   :  { %4828 = vst [vmem:[#allocation32_spill] sm:$0xff] %v3859_v51  ;;  %v2010_v38 = vmax.f32 %v1545_v35, 0.0  ;;  %v2076_v4 = vmax.f32 %v1743_v57, 0.0  ;;  %v83_v57 = vld [vmem:[%s4787_s0 + $0x160] sm:$0xff] }
 0x15e   :  { %2666 = vmatmul.msk.f32.gmra.mxu0 %vm301_vm1, %v82_v52  ;;  %2734 = vmatmul.msk.f32.gmra.mxu1 %vm301_vm1, %v150_v13  ;;  %v274_v52 = vld [vmem:[%s4787_s0 + $0x758] sm:$0xff] }
 0x15f   :  { %v2285_v20 = vadd.f32 %v2284_v15, %v2010_v38  ;;  %v2361_v60 = vadd.f32 %v2360_v39, %v2076_v4  ;;  %2791 = vmatmul.msk.f32.gmra.mxu2 %vm301_vm1, %v207_v45  ;;  %2857 = vmatmul.msk.f32.gmra.mxu3 %vm301_vm1, %v273_v62  ;;  %v151_v15 = vld [vmem:[%s4787_s0 + $0x380] sm:$0xff]  ;;  %v208_v39 = vld [vmem:[%s4787_s0 + $0x548] sm:$0xff] }
 0x162   :  { %v1547_v63 = vpop.f32.mrf.mxu2  ;;  %v1745_v44 = vpop.f32.mrf.mxu3 }
 0x163   :  { %v1548_v46 = vadd.f32 %v3307_v24, %v1547_v63  ;;  %v1746_v51 = vadd.f32 %v3307_v24, %v1745_v44  ;;  %v3879_v25 = vpop.f32.mrf.mxu0  ;;  %v3881_v35 = vpop.f32.mrf.mxu1 }
 0x164   :  { %4829 = vst [vmem:[#allocation33_spill] sm:$0xff] %v3879_v25 }
 0x165   :  { %v2011_v13 = vmax.f32 %v1548_v46, 0.0  ;;  %v2077_v45 = vmax.f32 %v1746_v51, 0.0  ;;  %v84_v51 = vld [vmem:[%s4787_s0 + $0x168] sm:$0xff] }
 0x166   :  { %2667 = vmatmul.msk.f32.gmra.mxu0 %vm301_vm1, %v83_v57  ;;  %2735 = vmatmul.msk.f32.gmra.mxu1 %vm301_vm1, %v151_v15  ;;  %v275_v57 = vld [vmem:[%s4787_s0 + $0x760] sm:$0xff] }
 0x167   :  { %v2286_v62 = vadd.f32 %v2285_v20, %v2011_v13  ;;  %v2362_v38 = vadd.f32 %v2361_v60, %v2077_v45  ;;  %2792 = vmatmul.msk.f32.gmra.mxu2 %vm301_vm1, %v208_v39  ;;  %2858 = vmatmul.msk.f32.gmra.mxu3 %vm301_vm1, %v274_v52  ;;  %v152_v20 = vld [vmem:[%s4787_s0 + $0x388] sm:$0xff]  ;;  %v209_v60 = vld [vmem:[%s4787_s0 + $0x550] sm:$0xff]  ;;  %v2431_v52 = vld [vmem:[%s4790_s3 + $0x60] sm:$0xff] }
 0x168   :  { %v2497_v13 = vld [vmem:[%s4792_s5 + $0x70] sm:$0xff]  ;;  %2465 = vmatpush.msrb.mxu1 %v2431_v52 }
 0x169   :  { %2504 = vmatpush.msrb.mxu2 %v2497_v13 }
 0x16a   :  { %v1550_v4 = vpop.f32.mrf.mxu2  ;;  %v1748_v63 = vpop.f32.mrf.mxu3 }
 0x16b   :  { %v1551_v44 = vadd.f32 %v3307_v24, %v1550_v4  ;;  %v1749_v25 = vadd.f32 %v3307_v24, %v1748_v63  ;;  %v3901_v54 = vpop.f32.mrf.mxu0  ;;  %v3903_v46 = vpop.f32.mrf.mxu1 }
 0x16c   :  { %4830 = vst [vmem:[#allocation34_spill] sm:$0xff] %v3901_v54 }
 0x16d   :  { %v2012_v15 = vmax.f32 %v1551_v44, 0.0  ;;  %v2078_v39 = vmax.f32 %v1749_v25, 0.0 }
 0x16e   :  { %2668 = vmatmul.msk.f32.gmra.mxu0 %vm301_vm1, %v84_v51  ;;  %2736 = vmatmul.msk.f32.gmra.mxu1 %vm301_vm1, %v152_v20 }
 0x16f   :  { %v2287_v45 = vadd.f32 %v2286_v62, %v2012_v15  ;;  %v2363_v4 = vadd.f32 %v2362_v38, %v2078_v39  ;;  %2793 = vmatmul.msk.f32.gmra.mxu2 %vm301_vm1, %v209_v60  ;;  %2859 = vmatmul.msk.f32.gmra.mxu3 %vm301_vm1, %v275_v57  ;;  %v85_v62 = vld [vmem:[%s4787_s0 + $0x170] sm:$0xff]  ;;  %v210_v60 = vld [vmem:[%s4787_s0 + $0x558] sm:$0xff]  ;;  %v276_v57 = vld [vmem:[%s4787_s0 + $0x768] sm:$0xff] }
 0x170   :  { %v153_v38 = vld [vmem:[%s4787_s0 + $0x390] sm:$0xff] }
 0x172   :  { %v1553_v25 = vpop.f32.mrf.mxu2  ;;  %v1751_v63 = vpop.f32.mrf.mxu3 }
 0x173   :  { %v1554_v44 = vadd.f32 %v3307_v24, %v1553_v25  ;;  %v1752_v51 = vadd.f32 %v3307_v24, %v1751_v63  ;;  %v3929_v20 = vpop.f32.mrf.mxu0  ;;  %v1385_v54 = vpop.f32.mrf.mxu1  ;;  %v3950_v63 = vld [vmem:[%s4789_s2] ss:$0 sm:$0xff] }
 0x174   :  { %4831 = vst [vmem:[#allocation35_spill] sm:$0xff] %v3929_v20 }
 0x175   :  { %v2013_v24 = vmax.f32 %v1554_v44, 0.0  ;;  %v2079_v15 = vmax.f32 %v1752_v51, 0.0 }
 0x176   :  { %2669 = vmatmul.msk.f32.gmra.mxu0 %vm301_vm1, %v85_v62  ;;  %2737 = vmatmul.msk.f32.gmra.mxu1 %vm301_vm1, %v153_v38 }
 0x177   :  { %v2288_v39 = vadd.f32 %v2287_v45, %v2013_v24  ;;  %v2364_v52 = vadd.f32 %v2363_v4, %v2079_v15  ;;  %2794 = vmatmul.msk.f32.gmra.mxu2 %vm301_vm1, %v210_v60  ;;  %2860 = vmatmul.msk.f32.gmra.mxu3 %vm301_vm1, %v276_v57  ;;  %v86_v45 = vld [vmem:[%s4787_s0 + $0x178] sm:$0xff]  ;;  %v211_v57 = vld [vmem:[%s4787_s0 + $0x560] sm:$0xff]  ;;  %v277_v24 = vld [vmem:[%s4787_s0 + $0x770] sm:$0xff] }
 0x178   :  { %v154_v4 = vld [vmem:[%s4787_s0 + $0x398] sm:$0xff] }
 0x179   :  { %v2430_v60 = vld [vmem:[%s4790_s3 + $0x58] sm:$0xff] }
 0x17a   :  { %v1556_v13 = vpop.f32.mrf.mxu2  ;;  %v1754_v25 = vpop.f32.mrf.mxu3  ;;  %2466 = vmatpush.msrb.mxu1 %v2430_v60 }
 0x17b   :  { %v1557_v44 = vadd.f32 %v3950_v63, %v1556_v13  ;;  %v1755_v51 = vadd.f32 %v3950_v63, %v1754_v25  ;;  %v3954_v62 = vpop.f32.mrf.mxu0  ;;  %v1388_v38 = vpop.f32.mrf.mxu1 }
 0x17c   :  { %4832 = vst [vmem:[#allocation36_spill] sm:$0xff] %v3954_v62 }
 0x17d   :  { %v2014_v15 = vmax.f32 %v1557_v44, 0.0  ;;  %v2080_v13 = vmax.f32 %v1755_v51, 0.0  ;;  %v87_v51 = vld [vmem:[%s4787_s0 + $0x180] sm:$0xff] }
 0x17e   :  { %2670 = vmatmul.msk.f32.gmra.mxu0 %vm301_vm1, %v86_v45  ;;  %2738 = vmatmul.msk.f32.gmra.mxu1 %vm301_vm1, %v154_v4  ;;  %v1383_v45 = vadd.f32 %v3950_v63, %v3903_v46 }
 0x17f   :  { %v2289_v25 = vadd.f32 %v2288_v39, %v2014_v15  ;;  %v2365_v62 = vadd.f32 %v2364_v52, %v2080_v13  ;;  %2795 = vmatmul.msk.f32.gmra.mxu2 %vm301_vm1, %v211_v57  ;;  %2861 = vmatmul.msk.f32.gmra.mxu3 %vm301_vm1, %v277_v24  ;;  %v155_v39 = vld [vmem:[%s4787_s0 + $0x3a0] sm:$0xff]  ;;  %v1380_v52 = vadd.f32 %v3950_v63, %v3881_v35 }
 0x180   :  { %v1956_v46 = vmax.f32 %v1383_v45, 0.0  ;;  %v1386_v15 = vadd.f32 %v3950_v63, %v1385_v54  ;;  %v1389_v54 = vadd.f32 %v3950_v63, %v1388_v38  ;;  %v213_v45 = vld [vmem:[%s4787_s0 + $0x570] sm:$0xff] }
 0x181   :  { %v1955_v35 = vmax.f32 %v1380_v52, 0.0 }
 0x182   :  { %v1559_v20 = vpop.f32.mrf.mxu2  ;;  %v1757_v59 = vpop.f32.mrf.mxu3  ;;  %v1957_v52 = vmax.f32 %v1386_v15, 0.0 }
 0x183   :  { %v1560_v34 = vadd.f32 %v3950_v63, %v1559_v20  ;;  %v1758_v37 = vadd.f32 %v3950_v63, %v1757_v59  ;;  %v3977_v21 = vpop.f32.mrf.mxu0  ;;  %v1391_v44 = vpop.f32.mrf.mxu1  ;;  %v212_v59 = vld [vmem:[%s4787_s0 + $0x568] sm:$0xff]  ;;  %v278_v20 = vld [vmem:[%s4787_s0 + $0x778] sm:$0xff] }
 0x185   :  { %v2015_v4 = vmax.f32 %v1560_v34, 0.0  ;;  %v2081_v60 = vmax.f32 %v1758_v37, 0.0 }
 0x186   :  { %2671 = vmatmul.msk.f32.gmra.mxu0 %vm301_vm1, %v87_v51  ;;  %2739 = vmatmul.msk.f32.gmra.mxu1 %vm301_vm1, %v155_v39  ;;  %v2226_v39 = vadd.f32 %v1956_v46, %v1955_v35  ;;  %v1958_v46 = vmax.f32 %v1389_v54, 0.0  ;;  %v280_v54 = vld [vmem:[%s4787_s0 + $0x788] sm:$0xff] }
 0x187   :  { %v2290_v57 = vadd.f32 %v2289_v25, %v2015_v4  ;;  %v2366_v24 = vadd.f32 %v2365_v62, %v2081_v60  ;;  %2796 = vmatmul.msk.f32.gmra.mxu2 %vm301_vm1, %v212_v59  ;;  %2862 = vmatmul.msk.f32.gmra.mxu3 %vm301_vm1, %v278_v20  ;;  %v88_v62 = vld [vmem:[%s4787_s0 + $0x188] sm:$0xff] }
 0x188   :  { %v156_v25 = vld [vmem:[%s4787_s0 + $0x3a8] sm:$0xff]  ;;  %v2227_v35 = vadd.f32 %v2226_v39, %v1957_v52  ;;  %v214_v52 = vld [vmem:[%s4787_s0 + $0x578] sm:$0xff] }
 0x189   :  { %v2496_v4 = vld [vmem:[%s4792_s5 + $0x68] sm:$0xff] }
 0x18a   :  { %v1562_v13 = vpop.f32.mrf.mxu2  ;;  %v1760_v6 = vpop.f32.mrf.mxu3  ;;  %2505 = vmatpush.msrb.mxu2 %v2496_v4 }
 0x18b   :  { %v1563_v50 = vadd.f32 %v3950_v63, %v1562_v13  ;;  %v1761_v37 = vadd.f32 %v3950_v63, %v1760_v6  ;;  %v4002_v34 = vpop.f32.mrf.mxu0  ;;  %v1394_v51 = vpop.f32.mrf.mxu1  ;;  %v279_v6 = vld [vmem:[%s4787_s0 + $0x780] sm:$0xff] }
 0x18d   :  { %v2016_v59 = vmax.f32 %v1563_v50, 0.0  ;;  %v2082_v20 = vmax.f32 %v1761_v37, 0.0  ;;  %v1392_v50 = vadd.f32 %v3950_v63, %v1391_v44  ;;  %v1395_v44 = vadd.f32 %v3950_v63, %v1394_v51 }
 0x18e   :  { %2672 = vmatmul.msk.f32.gmra.mxu0 %vm301_vm1, %v88_v62  ;;  %2740 = vmatmul.msk.f32.gmra.mxu1 %vm301_vm1, %v156_v25  ;;  %v2228_v25 = vadd.f32 %v2227_v35, %v1958_v46  ;;  %v2429_v35 = vld [vmem:[%s4790_s3 + $0x50] sm:$0xff] }
 0x18f   :  { %v2291_v60 = vadd.f32 %v2290_v57, %v2016_v59  ;;  %v4022_v38 = vadd.f32 %v2366_v24, %v2082_v20  ;;  %2797 = vmatmul.msk.f32.gmra.mxu2 %vm301_vm1, %v213_v45  ;;  %2863 = vmatmul.msk.f32.gmra.mxu3 %vm301_vm1, %v279_v6  ;;  %v89_v57 = vld [vmem:[%s4787_s0 + $0x190] sm:$0xff]  ;;  %v1959_v39 = vmax.f32 %v1392_v50, 0.0  ;;  %v1960_v20 = vmax.f32 %v1395_v44, 0.0 }
 0x190   :  { %v157_v24 = vld [vmem:[%s4787_s0 + $0x3b0] sm:$0xff]  ;;  %2467 = vmatpush.msrb.mxu1 %v2429_v35 }
 0x191   :  { %4833 = vst [vmem:[#allocation37_spill] sm:$0xff] %v4022_v38  ;;  %v2229_v51 = vadd.f32 %v2228_v25, %v1959_v39 }
 0x192   :  { %v1565_v15 = vpop.f32.mrf.mxu2  ;;  %v1763_v13 = vpop.f32.mrf.mxu3 }
 0x193   :  { %v1566_v37 = vadd.f32 %v3950_v63, %v1565_v15  ;;  %v4028_v43 = vpop.f32.mrf.mxu0  ;;  %v1397_v62 = vpop.f32.mrf.mxu1  ;;  %v1764_v59 = vadd.f32 %v3950_v63, %v1763_v13  ;;  %v2230_v25 = vadd.f32 %v2229_v51, %v1960_v20 }
 0x194   :  { %v1398_v4 = vadd.f32 %v3950_v63, %v1397_v62  ;;  %v158_v62 = vld [vmem:[%s4787_s0 + $0x3b8] sm:$0xff] }
 0x195   :  { %v2017_v45 = vmax.f32 %v1566_v37, 0.0  ;;  %v2083_v15 = vmax.f32 %v1764_v59, 0.0 }
 0x196   :  { %2673 = vmatmul.msk.f32.gmra.mxu0 %vm301_vm1, %v89_v57  ;;  %2741 = vmatmul.msk.f32.gmra.mxu1 %vm301_vm1, %v157_v24  ;;  %v90_v24 = vld [vmem:[%s4787_s0 + $0x198] sm:$0xff]  ;;  %v1961_v39 = vmax.f32 %v1398_v4, 0.0 }
 0x197   :  { %v2292_v6 = vadd.f32 %v2291_v60, %v2017_v45  ;;  %2798 = vmatmul.msk.f32.gmra.mxu2 %vm301_vm1, %v214_v52  ;;  %2864 = vmatmul.msk.f32.gmra.mxu3 %vm301_vm1, %v280_v54  ;;  %v215_v52 = vld [vmem:[%s4787_s0 + $0x580] sm:$0xff]  ;;  %v281_v54 = vld [vmem:[%s4787_s0 + $0x790] sm:$0xff] }
 0x198   :  { %v2231_v20 = vadd.f32 %v2230_v25, %v1961_v39  ;;  %v282_v25 = vld [vmem:[%s4787_s0 + $0x798] sm:$0xff] }
 0x19a   :  { %v1568_v46 = vpop.f32.mrf.mxu2  ;;  %v1766_v50 = vpop.f32.mrf.mxu3 }
 0x19b   :  { %v1569_v60 = vadd.f32 %v3950_v63, %v1568_v46  ;;  %v1767_v13 = vadd.f32 %v3950_v63, %v1766_v50  ;;  %v4054_v37 = vpop.f32.mrf.mxu0  ;;  %v1400_v57 = vpop.f32.mrf.mxu1 }
 0x19c   :  { %v1401_v44 = vadd.f32 %v3950_v63, %v1400_v57 }
 0x19d   :  { %v2018_v45 = vmax.f32 %v1569_v60, 0.0  ;;  %v2084_v59 = vmax.f32 %v1767_v13, 0.0  ;;  %v91_v13 = vld [vmem:[%s4787_s0 + $0x1a0] sm:$0xff] }
 0x19e   :  { %2674 = vmatmul.msk.f32.gmra.mxu0 %vm301_vm1, %v90_v24  ;;  %2742 = vmatmul.msk.f32.gmra.mxu1 %vm301_vm1, %v158_v62  ;;  %v1962_v4 = vmax.f32 %v1401_v44, 0.0  ;;  %v216_v62 = vld [vmem:[%s4787_s0 + $0x588] sm:$0xff] }
 0x19f   :  { %v4071_v35 = vadd.f32 %v2292_v6, %v2018_v45  ;;  %v2374_v51 = vadd.f32 %v2084_v59, %v2083_v15  ;;  %2799 = vmatmul.msk.f32.gmra.mxu2 %vm301_vm1, %v215_v52  ;;  %2865 = vmatmul.msk.f32.gmra.mxu3 %vm301_vm1, %v281_v54  ;;  %v159_v6 = vld [vmem:[%s4787_s0 + $0x3c0] sm:$0xff] }
 0x1a0   :  { %v2232_v15 = vadd.f32 %v2231_v20, %v1962_v4  ;;  %v2495_v59 = vld [vmem:[%s4792_s5 + $0x60] sm:$0xff] }
 0x1a1   :  { %4834 = vst [vmem:[#allocation38_spill] sm:$0xff] %v4071_v35  ;;  %2506 = vmatpush.msrb.mxu2 %v2495_v59 }
 0x1a2   :  { %v1571_v46 = vpop.f32.mrf.mxu2  ;;  %v1769_v50 = vpop.f32.mrf.mxu3 }
 0x1a3   :  { %v1770_v57 = vadd.f32 %v3950_v63, %v1769_v50  ;;  %v4076_v38 = vpop.f32.mrf.mxu0  ;;  %v1403_v60 = vpop.f32.mrf.mxu1  ;;  %v1572_v52 = vadd.f32 %v3950_v63, %v1571_v46  ;;  %v92_v46 = vld [vmem:[%s4787_s0 + $0x1a8] sm:$0xff] }
 0x1a4   :  { %v1404_v24 = vadd.f32 %v3950_v63, %v1403_v60 }
 0x1a5   :  { %v2085_v39 = vmax.f32 %v1770_v57, 0.0  ;;  %v2019_v50 = vmax.f32 %v1572_v52, 0.0 }
 0x1a6   :  { %v1963_v44 = vmax.f32 %v1404_v24, 0.0  ;;  %2675 = vmatmul.msk.f32.gmra.mxu0 %vm301_vm1, %v91_v13  ;;  %2743 = vmatmul.msk.f32.gmra.mxu1 %vm301_vm1, %v159_v6  ;;  %v160_v6 = vld [vmem:[%s4787_s0 + $0x3c8] sm:$0xff]  ;;  %v217_v24 = vld [vmem:[%s4787_s0 + $0x590] sm:$0xff] }
 0x1a7   :  { %v2375_v54 = vadd.f32 %v2374_v51, %v2085_v39  ;;  %2800 = vmatmul.msk.f32.gmra.mxu2 %vm301_vm1, %v216_v62  ;;  %2866 = vmatmul.msk.f32.gmra.mxu3 %vm301_vm1, %v282_v25  ;;  %v283_v62 = vld [vmem:[%s4787_s0 + $0x7a0] sm:$0xff] }
 0x1a8   :  { %v2233_v45 = vadd.f32 %v2232_v15, %v1963_v44 }
 0x1aa   :  { %v1574_v20 = vpop.f32.mrf.mxu2  ;;  %v1772_v4 = vpop.f32.mrf.mxu3 }
 0x1ab   :  { %v1575_v57 = vadd.f32 %v3950_v63, %v1574_v20  ;;  %v1773_v60 = vadd.f32 %v3950_v63, %v1772_v4  ;;  %v4101_v13 = vpop.f32.mrf.mxu0  ;;  %v1406_v51 = vpop.f32.mrf.mxu1 }
 0x1ac   :  { %v1407_v15 = vadd.f32 %v3950_v63, %v1406_v51  ;;  %v1203_v49 = vadd.f32 %v3950_v63, %v4101_v13 }
 0x1ad   :  { %v2020_v25 = vmax.f32 %v1575_v57, 0.0  ;;  %v2086_v39 = vmax.f32 %v1773_v60, 0.0 }
 0x1ae   :  { %v1964_v44 = vmax.f32 %v1407_v15, 0.0  ;;  %2676 = vmatmul.msk.f32.gmra.mxu0 %vm301_vm1, %v92_v46  ;;  %2744 = vmatmul.msk.f32.gmra.mxu1 %vm301_vm1, %v160_v6  ;;  %v93_v46 = vld [vmem:[%s4787_s0 + $0x1b0] sm:$0xff]  ;;  %v284_v6 = vld [vmem:[%s4787_s0 + $0x7a8] sm:$0xff] }
 0x1af   :  { %v2300_v52 = vadd.f32 %v2020_v25, %v2019_v50  ;;  %v2376_v59 = vadd.f32 %v2375_v54, %v2086_v39  ;;  %2801 = vmatmul.msk.f32.gmra.mxu2 %vm301_vm1, %v217_v24  ;;  %2867 = vmatmul.msk.f32.gmra.mxu3 %vm301_vm1, %v283_v62  ;;  %v161_v54 = vld [vmem:[%s4787_s0 + $0x3d0] sm:$0xff] }
 0x1b0   :  { %v2234_v20 = vadd.f32 %v2233_v45, %v1964_v44  ;;  %v218_v45 = vld [vmem:[%s4787_s0 + $0x598] sm:$0xff]  ;;  %v2428_v44 = vld [vmem:[%s4790_s3 + $0x48] sm:$0xff] }
 0x1b1   :  { %2468 = vmatpush.msrb.mxu1 %v2428_v44 }
 0x1b2   :  { %v1577_v4 = vpop.f32.mrf.mxu2  ;;  %v1775_v51 = vpop.f32.mrf.mxu3 }
 0x1b3   :  { %v1578_v35 = vadd.f32 %v3950_v63, %v1577_v4  ;;  %v1776_v28 = vadd.f32 %v3950_v63, %v1775_v51  ;;  %v4122_v57 = vpop.f32.mrf.mxu0  ;;  %v1409_v60 = vpop.f32.mrf.mxu1 }
 0x1b4   :  { %v1410_v50 = vadd.f32 %v3950_v63, %v1409_v60 }
 0x1b5   :  { %v2021_v15 = vmax.f32 %v1578_v35, 0.0  ;;  %v2087_v24 = vmax.f32 %v1776_v28, 0.0 }
 0x1b6   :  { %v1965_v62 = vmax.f32 %v1410_v50, 0.0  ;;  %2677 = vmatmul.msk.f32.gmra.mxu0 %vm301_vm1, %v93_v46  ;;  %2745 = vmatmul.msk.f32.gmra.mxu1 %vm301_vm1, %v161_v54  ;;  %v162_v54 = vld [vmem:[%s4787_s0 + $0x3d8] sm:$0xff]  ;;  %v219_v50 = vld [vmem:[%s4787_s0 + $0x5a0] sm:$0xff] }
 0x1b7   :  { %v2301_v25 = vadd.f32 %v2300_v52, %v2021_v15  ;;  %v2377_v39 = vadd.f32 %v2376_v59, %v2087_v24  ;;  %2802 = vmatmul.msk.f32.gmra.mxu2 %vm301_vm1, %v218_v45  ;;  %2868 = vmatmul.msk.f32.gmra.mxu3 %vm301_vm1, %v284_v6  ;;  %v94_v59 = vld [vmem:[%s4787_s0 + $0x1b8] sm:$0xff]  ;;  %v285_v45 = vld [vmem:[%s4787_s0 + $0x7b0] sm:$0xff] }
 0x1b8   :  { %v2235_v4 = vadd.f32 %v2234_v20, %v1965_v62 }
 0x1ba   :  { %v1580_v51 = vpop.f32.mrf.mxu2  ;;  %v1778_v35 = vpop.f32.mrf.mxu3 }
 0x1bb   :  { %v1581_v28 = vadd.f32 %v3950_v63, %v1580_v51  ;;  %v1779_v60 = vadd.f32 %v3950_v63, %v1778_v35  ;;  %v4146_v46 = vpop.f32.mrf.mxu0  ;;  %v1412_v52 = vpop.f32.mrf.mxu1 }
 0x1bc   :  { %v1413_v20 = vadd.f32 %v3950_v63, %v1412_v52 }
 0x1bd   :  { %v2022_v6 = vmax.f32 %v1581_v28, 0.0  ;;  %v2088_v15 = vmax.f32 %v1779_v60, 0.0 }
 0x1be   :  { %v1966_v24 = vmax.f32 %v1413_v20, 0.0  ;;  %2678 = vmatmul.msk.f32.gmra.mxu0 %vm301_vm1, %v94_v59  ;;  %2746 = vmatmul.msk.f32.gmra.mxu1 %vm301_vm1, %v162_v54  ;;  %v95_v59 = vld [vmem:[%s4787_s0 + $0x1c0] sm:$0xff]  ;;  %v286_v54 = vld [vmem:[%s4787_s0 + $0x7b8] sm:$0xff] }
 0x1bf   :  { %v2302_v62 = vadd.f32 %v2301_v25, %v2022_v6  ;;  %v2378_v44 = vadd.f32 %v2377_v39, %v2088_v15  ;;  %2803 = vmatmul.msk.f32.gmra.mxu2 %vm301_vm1, %v219_v50  ;;  %2869 = vmatmul.msk.f32.gmra.mxu3 %vm301_vm1, %v285_v45  ;;  %v163_v25 = vld [vmem:[%s4787_s0 + $0x3e0] sm:$0xff] }
 0x1c0   :  { %v2236_v51 = vadd.f32 %v2235_v4, %v1966_v24  ;;  %v220_v4 = vld [vmem:[%s4787_s0 + $0x5a8] sm:$0xff] }
 0x1c2   :  { %v1583_v35 = vpop.f32.mrf.mxu2  ;;  %v1781_v52 = vpop.f32.mrf.mxu3 }
 0x1c3   :  { %v1584_v22 = vadd.f32 %v3950_v63, %v1583_v35  ;;  %v1782_v1 = vadd.f32 %v3950_v63, %v1781_v52  ;;  %v4167_v28 = vpop.f32.mrf.mxu0  ;;  %v1415_v60 = vpop.f32.mrf.mxu1  ;;  %v2494_v35 = vld [vmem:[%s4792_s5 + $0x58] sm:$0xff] }
 0x1c4   :  { %v1416_v39 = vadd.f32 %v3950_v63, %v1415_v60  ;;  %2507 = vmatpush.msrb.mxu2 %v2494_v35  ;;  %v1191_v35 = vadd.f32 %v3950_v63, %v4002_v34 }
 0x1c5   :  { %v2023_v20 = vmax.f32 %v1584_v22, 0.0  ;;  %v2089_v50 = vmax.f32 %v1782_v1, 0.0 }
 0x1c6   :  { %v1967_v45 = vmax.f32 %v1416_v39, 0.0  ;;  %2679 = vmatmul.msk.f32.gmra.mxu0 %vm301_vm1, %v95_v59  ;;  %2747 = vmatmul.msk.f32.gmra.mxu1 %vm301_vm1, %v163_v25  ;;  %v221_v25 = vld [vmem:[%s4787_s0 + $0x5b0] sm:$0xff]  ;;  %v287_v39 = vld [vmem:[%s4787_s0 + $0x7c0] sm:$0xff] }
 0x1c7   :  { %v2303_v6 = vadd.f32 %v2302_v62, %v2023_v20  ;;  %v2379_v15 = vadd.f32 %v2378_v44, %v2089_v50  ;;  %2804 = vmatmul.msk.f32.gmra.mxu2 %vm301_vm1, %v220_v4  ;;  %2870 = vmatmul.msk.f32.gmra.mxu3 %vm301_vm1, %v286_v54  ;;  %v96_v44 = vld [vmem:[%s4787_s0 + $0x1c8] sm:$0xff] }
 0x1c8   :  { %v2237_v24 = vadd.f32 %v2236_v51, %v1967_v45 }
 0x1ca   :  { %v1586_v52 = vpop.f32.mrf.mxu2  ;;  %v1784_v22 = vpop.f32.mrf.mxu3 }
 0x1cb   :  { %v1587_v1 = vadd.f32 %v3950_v63, %v1586_v52  ;;  %v1785_v60 = vadd.f32 %v3950_v63, %v1784_v22  ;;  %v4191_v59 = vpop.f32.mrf.mxu0  ;;  %v1418_v62 = vpop.f32.mrf.mxu1  ;;  %v2427_v22 = vld [vmem:[%s4790_s3 + $0x40] sm:$0xff] }
 0x1cc   :  { %v1419_v51 = vadd.f32 %v3950_v63, %v1418_v62  ;;  %2469 = vmatpush.msrb.mxu1 %v2427_v22 }
 0x1cd   :  { %v2024_v4 = vmax.f32 %v1587_v1, 0.0  ;;  %v2090_v54 = vmax.f32 %v1785_v60, 0.0  ;;  %v2539_v1 = vld [vmem:[%s4794_s7 + $0x78] sm:$0xff] }
 0x1ce   :  { %v1968_v20 = vmax.f32 %v1419_v51, 0.0  ;;  %2680 = vmatmul.msk.f32.gmra.mxu0 %vm301_vm1, %v96_v44  ;;  %2544 = vmatpush.msrb.mxu3 %v2539_v1 }
 0x1cf   :  { %v2304_v50 = vadd.f32 %v2303_v6, %v2024_v4  ;;  %v2380_v45 = vadd.f32 %v2379_v15, %v2090_v54  ;;  %2805 = vmatmul.msk.f32.gmra.mxu2 %vm301_vm1, %v221_v25  ;;  %2871 = vmatmul.msk.f32.gmra.mxu3 %vm301_vm1, %v287_v39  ;;  %v1188_v6 = vadd.f32 %v3950_v63, %v3977_v21  ;;  %v97_v25 = vld [vmem:[%s4787_s0 + $0x1d0] sm:$0xff]  ;;  %v1892_v39 = vmax.f32 %v1191_v35, 0.0  ;;  %v288_v54 = vld [vmem:[%s4787_s0 + $0x7c8] sm:$0xff] }
 0x1d0   :  { %v2238_v52 = vadd.f32 %v2237_v24, %v1968_v20  ;;  %v1194_v15 = vadd.f32 %v3950_v63, %v4028_v43  ;;  %v1197_v4 = vadd.f32 %v3950_v63, %v4054_v37  ;;  %v222_v43 = vld [vmem:[%s4787_s0 + $0x5b8] sm:$0xff] }
 0x1d1   :  { %v1891_v22 = vmax.f32 %v1188_v6, 0.0 }
 0x1d2   :  { %v1589_v60 = vpop.f32.mrf.mxu2  ;;  %v1787_v62 = vpop.f32.mrf.mxu3  ;;  %v1893_v1 = vmax.f32 %v1194_v15, 0.0  ;;  %v1894_v14 = vmax.f32 %v1197_v4, 0.0  ;;  %v1209_v4 = vadd.f32 %v3950_v63, %v4146_v46 }
 0x1d3   :  { %v1590_v34 = vadd.f32 %v3950_v63, %v1589_v60  ;;  %v1788_v24 = vadd.f32 %v3950_v63, %v1787_v62  ;;  %v1217_v44 = vpop.f32.mrf.mxu0  ;;  %v1421_v51 = vpop.f32.mrf.mxu1  ;;  %v1200_v60 = vadd.f32 %v3950_v63, %v4076_v38  ;;  %v1206_v38 = vadd.f32 %v3950_v63, %v4122_v57 }
 0x1d4   :  { %v1422_v21 = vadd.f32 %v3950_v63, %v1421_v51  ;;  %v2152_v51 = vadd.f32 %v1892_v39, %v1891_v22  ;;  %v98_v39 = vld [vmem:[%s4787_s0 + $0x1d8] sm:$0xff] }
 0x1d5   :  { %v2025_v20 = vmax.f32 %v1590_v34, 0.0  ;;  %v2091_v62 = vmax.f32 %v1788_v24, 0.0  ;;  %v1895_v15 = vmax.f32 %v1200_v60, 0.0 }
 0x1d6   :  { %v1969_v35 = vmax.f32 %v1422_v21, 0.0  ;;  %2681 = vmatmul.msk.f32.gmra.mxu0 %vm301_vm1, %v97_v25  ;;  %v2153_v6 = vadd.f32 %v2152_v51, %v1893_v1  ;;  %v1897_v1 = vmax.f32 %v1206_v38, 0.0  ;;  %v1215_v51 = vadd.f32 %v3950_v63, %v4191_v59 }
 0x1d7   :  { %v2305_v37 = vadd.f32 %v2304_v50, %v2025_v20  ;;  %2806 = vmatmul.msk.f32.gmra.mxu2 %vm301_vm1, %v222_v43  ;;  %2872 = vmatmul.msk.f32.gmra.mxu3 %vm301_vm1, %v288_v54  ;;  %v2381_v25 = vadd.f32 %v2380_v45, %v2091_v62  ;;  %v223_v45 = vld [vmem:[%s4787_s0 + $0x5c0] sm:$0xff]  ;;  %v1898_v62 = vmax.f32 %v1209_v4, 0.0 }
 0x1d8   :  { %v2239_v34 = vadd.f32 %v2238_v52, %v1969_v35  ;;  %v2154_v13 = vadd.f32 %v2153_v6, %v1894_v14  ;;  %v1896_v52 = vmax.f32 %v1203_v49, 0.0  ;;  %v1212_v14 = vadd.f32 %v3950_v63, %v4167_v28 }
 0x1d9   :  { %v1900_v59 = vmax.f32 %v1215_v51, 0.0  ;;  %v2493_v51 = vld [vmem:[%s4792_s5 + $0x50] sm:$0xff] }
 0x1da   :  { %v1592_v21 = vpop.f32.mrf.mxu2  ;;  %v1790_v17 = vpop.f32.mrf.mxu3  ;;  %v2155_v22 = vadd.f32 %v2154_v13, %v1895_v15  ;;  %v1899_v38 = vmax.f32 %v1212_v14, 0.0  ;;  %2508 = vmatpush.msrb.mxu2 %v2493_v51 }
 0x1db   :  { %v1593_v50 = vadd.f32 %v3950_v63, %v1592_v21  ;;  %v1791_v24 = vadd.f32 %v3950_v63, %v1790_v17  ;;  %v1220_v43 = vpop.f32.mrf.mxu0  ;;  %v1424_v54 = vpop.f32.mrf.mxu1  ;;  %v289_v17 = vld [vmem:[%s4787_s0 + $0x7d0] sm:$0xff]  ;;  %v1218_v21 = vadd.f32 %v3950_v63, %v1217_v44  ;;  %v224_v44 = vld [vmem:[%s4787_s0 + $0x5c8] sm:$0xff] }
 0x1dc   :  { %v1425_v57 = vadd.f32 %v3950_v63, %v1424_v54  ;;  %v2156_v35 = vadd.f32 %v2155_v22, %v1896_v52  ;;  %v99_v52 = vld [vmem:[%s4787_s0 + $0x1e0] sm:$0xff] }
 0x1dd   :  { %v2092_v20 = vmax.f32 %v1791_v24, 0.0  ;;  %v2026_v46 = vmax.f32 %v1593_v50, 0.0  ;;  %v1901_v22 = vmax.f32 %v1218_v21, 0.0 }
 0x1de   :  { %v1970_v49 = vmax.f32 %v1425_v57, 0.0  ;;  %2682 = vmatmul.msk.f32.gmra.mxu0 %vm301_vm1, %v98_v39  ;;  %v2157_v15 = vadd.f32 %v2156_v35, %v1897_v1 }
 0x1df   :  { %v2382_v60 = vadd.f32 %v2381_v25, %v2092_v20  ;;  %2807 = vmatmul.msk.f32.gmra.mxu2 %vm301_vm1, %v223_v45  ;;  %2873 = vmatmul.msk.f32.gmra.mxu3 %vm301_vm1, %v289_v17  ;;  %v2306_v54 = vadd.f32 %v2305_v37, %v2026_v46  ;;  %v290_v37 = vld [vmem:[%s4787_s0 + $0x7d8] sm:$0xff] }
 0x1e0   :  { %v2240_v6 = vadd.f32 %v2239_v34, %v1970_v49  ;;  %v2158_v4 = vadd.f32 %v2157_v15, %v1898_v62  ;;  %v1221_v34 = vadd.f32 %v3950_v63, %v1220_v43 }
 0x1e2   :  { %v1595_v28 = vpop.f32.mrf.mxu2  ;;  %v1793_v24 = vpop.f32.mrf.mxu3  ;;  %v2159_v20 = vadd.f32 %v2158_v4, %v1899_v38  ;;  %v1902_v35 = vmax.f32 %v1221_v34, 0.0  ;;  %v291_v4 = vld [vmem:[%s4787_s0 + $0x7e0] sm:$0xff] }
 0x1e3   :  { %v1596_v50 = vadd.f32 %v3950_v63, %v1595_v28  ;;  %v1794_v25 = vadd.f32 %v3950_v63, %v1793_v24  ;;  %v1223_v39 = vpop.f32.mrf.mxu0  ;;  %v1427_v13 = vpop.f32.mrf.mxu1 }
 0x1e4   :  { %v1428_v57 = vadd.f32 %v3950_v63, %v1427_v13  ;;  %v1224_v1 = vadd.f32 %v3950_v63, %v1223_v39  ;;  %v2160_v46 = vadd.f32 %v2159_v20, %v1900_v59  ;;  %v2426_v20 = vld [vmem:[%s4790_s3 + $0x38] sm:$0xff] }
 0x1e5   :  { %v2027_v45 = vmax.f32 %v1596_v50, 0.0  ;;  %v2093_v17 = vmax.f32 %v1794_v25, 0.0  ;;  %v100_v25 = vld [vmem:[%s4787_s0 + $0x1e8] sm:$0xff]  ;;  %2470 = vmatpush.msrb.mxu1 %v2426_v20 }
 0x1e6   :  { %v1971_v14 = vmax.f32 %v1428_v57, 0.0  ;;  %2683 = vmatmul.msk.f32.gmra.mxu0 %vm301_vm1, %v99_v52  ;;  %v2161_v15 = vadd.f32 %v2160_v46, %v1901_v22  ;;  %v1903_v38 = vmax.f32 %v1224_v1, 0.0  ;;  %v225_v52 = vld [vmem:[%s4787_s0 + $0x5d0] sm:$0xff] }
 0x1e7   :  { %v2307_v43 = vadd.f32 %v2306_v54, %v2027_v45  ;;  %v2383_v49 = vadd.f32 %v2382_v60, %v2093_v17  ;;  %2808 = vmatmul.msk.f32.gmra.mxu2 %vm301_vm1, %v224_v44  ;;  %2874 = vmatmul.msk.f32.gmra.mxu3 %vm301_vm1, %v290_v37 }
 0x1e8   :  { %v2241_v62 = vadd.f32 %v2240_v6, %v1971_v14  ;;  %v2162_v6 = vadd.f32 %v2161_v15, %v1902_v35  ;;  %v101_v15 = vld [vmem:[%s4787_s0 + $0x1f0] sm:$0xff] }
 0x1ea   :  { %v1598_v21 = vpop.f32.mrf.mxu2  ;;  %v1796_v28 = vpop.f32.mrf.mxu3  ;;  %v2163_v57 = vadd.f32 %v2162_v6, %v1903_v38 }
 0x1eb   :  { %v1599_v24 = vadd.f32 %v3950_v63, %v1598_v21  ;;  %v1797_v60 = vadd.f32 %v3950_v63, %v1796_v28  ;;  %v1226_v54 = vpop.f32.mrf.mxu0  ;;  %v1430_v50 = vpop.f32.mrf.mxu1  ;;  %v292_v21 = vld [vmem:[%s4787_s0 + $0x7e8] sm:$0xff] }
 0x1ec   :  { %v1227_v39 = vadd.f32 %v3950_v63, %v1226_v54  ;;  %v1431_v13 = vadd.f32 %v3950_v63, %v1430_v50 }
 0x1ed   :  { %v2028_v59 = vmax.f32 %v1599_v24, 0.0  ;;  %v2094_v34 = vmax.f32 %v1797_v60, 0.0 }
 0x1ee   :  { %v1904_v44 = vmax.f32 %v1227_v39, 0.0  ;;  %v1972_v37 = vmax.f32 %v1431_v13, 0.0  ;;  %2684 = vmatmul.msk.f32.gmra.mxu0 %vm301_vm1, %v100_v25  ;;  %v2538_v25 = vld [vmem:[%s4794_s7 + $0x70] sm:$0xff] }
 0x1ef   :  { %v2308_v45 = vadd.f32 %v2307_v43, %v2028_v59  ;;  %v2384_v17 = vadd.f32 %v2383_v49, %v2094_v34  ;;  %2809 = vmatmul.msk.f32.gmra.mxu2 %vm301_vm1, %v225_v52  ;;  %2875 = vmatmul.msk.f32.gmra.mxu3 %vm301_vm1, %v291_v4 }
 0x1f0   :  { %v2164_v22 = vadd.f32 %v2163_v57, %v1904_v44  ;;  %v4302_v1 = vadd.f32 %v2241_v62, %v1972_v37  ;;  %v226_v62 = vld [vmem:[%s4787_s0 + $0x5d8] sm:$0xff]  ;;  %2545 = vmatpush.msrb.mxu3 %v2538_v25  ;;  %v227_v37 = vld [vmem:[%s4787_s0 + $0x5e0] sm:$0xff] }
 0x1f1   :  { %v102_v57 = vld [vmem:[%s4787_s0 + $0x1f8] sm:$0xff] }
 0x1f2   :  { %v1601_v14 = vpop.f32.mrf.mxu2  ;;  %v1799_v46 = vpop.f32.mrf.mxu3 }
 0x1f3   :  { %v1602_v35 = vadd.f32 %v3950_v63, %v1601_v14  ;;  %v1800_v51 = vadd.f32 %v3950_v63, %v1799_v46  ;;  %v1229_v43 = vpop.f32.mrf.mxu0  ;;  %v4306_v49 = vpop.f32.mrf.mxu1 }
 0x1f4   :  { %v1230_v38 = vadd.f32 %v3950_v63, %v1229_v43 }
 0x1f5   :  { %v2029_v28 = vmax.f32 %v1602_v35, 0.0  ;;  %v2095_v24 = vmax.f32 %v1800_v51, 0.0 }
 0x1f6   :  { %v1905_v60 = vmax.f32 %v1230_v38, 0.0  ;;  %2685 = vmatmul.msk.f32.gmra.mxu0 %vm301_vm1, %v101_v15 }
 0x1f7   :  { %v2309_v54 = vadd.f32 %v2308_v45, %v2029_v28  ;;  %v2385_v50 = vadd.f32 %v2384_v17, %v2095_v24  ;;  %2810 = vmatmul.msk.f32.gmra.mxu2 %vm301_vm1, %v226_v62  ;;  %2876 = vmatmul.msk.f32.gmra.mxu3 %vm301_vm1, %v292_v21  ;;  %v293_v45 = vld [vmem:[%s4787_s0 + $0x7f0] sm:$0xff]  ;;  %v103_v28 = vld [vmem:[%s4787_s0 + $0x200] sm:$0xff] }
 0x1f8   :  { %v2165_v6 = vadd.f32 %v2164_v22, %v1905_v60  ;;  %v228_v60 = vld [vmem:[%s4787_s0 + $0x5e8] sm:$0xff] }
 0x1fa   :  { %v1604_v39 = vpop.f32.mrf.mxu2  ;;  %v1802_v13 = vpop.f32.mrf.mxu3 }
 0x1fb   :  { %v1605_v52 = vadd.f32 %v3950_v63, %v1604_v39  ;;  %v1803_v4 = vadd.f32 %v3950_v63, %v1802_v13  ;;  %v1232_v59 = vpop.f32.mrf.mxu0  ;;  %v4326_v34 = vpop.f32.mrf.mxu1 }
 0x1fc   :  { %v1233_v44 = vadd.f32 %v3950_v63, %v1232_v59  ;;  %v2425_v59 = vld [vmem:[%s4790_s3 + $0x30] sm:$0xff] }
 0x1fd   :  { %v2030_v17 = vmax.f32 %v1605_v52, 0.0  ;;  %v2096_v20 = vmax.f32 %v1803_v4, 0.0  ;;  %v2492_v4 = vld [vmem:[%s4792_s5 + $0x48] sm:$0xff]  ;;  %2471 = vmatpush.msrb.mxu1 %v2425_v59 }
 0x1fe   :  { %v1906_v22 = vmax.f32 %v1233_v44, 0.0  ;;  %2686 = vmatmul.msk.f32.gmra.mxu0 %vm301_vm1, %v102_v57  ;;  %2509 = vmatpush.msrb.mxu2 %v2492_v4 }
 0x1ff   :  { %v2310_v14 = vadd.f32 %v2309_v54, %v2030_v17  ;;  %v2386_v46 = vadd.f32 %v2385_v50, %v2096_v20  ;;  %2811 = vmatmul.msk.f32.gmra.mxu2 %vm301_vm1, %v227_v37  ;;  %2877 = vmatmul.msk.f32.gmra.mxu3 %vm301_vm1, %v293_v45  ;;  %v294_v54 = vld [vmem:[%s4787_s0 + $0x7f8] sm:$0xff] }
 0x200   :  { %v2166_v35 = vadd.f32 %v2165_v6, %v1906_v22  ;;  %v104_v22 = vld [vmem:[%s4787_s0 + $0x208] sm:$0xff] }
 0x202   :  { %v1607_v51 = vpop.f32.mrf.mxu2  ;;  %v1805_v43 = vpop.f32.mrf.mxu3 }
 0x203   :  { %v1608_v15 = vadd.f32 %v3950_v63, %v1607_v51  ;;  %v1806_v38 = vadd.f32 %v3950_v63, %v1805_v43  ;;  %v1235_v62 = vpop.f32.mrf.mxu0  ;;  %v4343_v21 = vpop.f32.mrf.mxu1 }
 0x204   :  { %v1236_v24 = vadd.f32 %v3950_v63, %v1235_v62 }
 0x205   :  { %v2031_v50 = vmax.f32 %v1608_v15, 0.0  ;;  %v2097_v25 = vmax.f32 %v1806_v38, 0.0 }
 0x206   :  { %v1907_v6 = vmax.f32 %v1236_v24, 0.0  ;;  %2687 = vmatmul.msk.f32.gmra.mxu0 %vm301_vm1, %v103_v28 }
 0x207   :  { %v2311_v39 = vadd.f32 %v2310_v14, %v2031_v50  ;;  %v2387_v13 = vadd.f32 %v2386_v46, %v2097_v25  ;;  %2812 = vmatmul.msk.f32.gmra.mxu2 %vm301_vm1, %v228_v60  ;;  %2878 = vmatmul.msk.f32.gmra.mxu3 %vm301_vm1, %v294_v54  ;;  %v229_v46 = vld [vmem:[%s4787_s0 + $0x5f0] sm:$0xff] }
 0x208   :  { %v2167_v52 = vadd.f32 %v2166_v35, %v1907_v6  ;;  %v105_v6 = vld [vmem:[%s4787_s0 + $0x210] sm:$0xff] }
 0x20a   :  { %v1610_v57 = vpop.f32.mrf.mxu2  ;;  %v1808_v44 = vpop.f32.mrf.mxu3 }
 0x20b   :  { %v1611_v37 = vadd.f32 %v3950_v63, %v1610_v57  ;;  %v1809_v45 = vadd.f32 %v3950_v63, %v1808_v44  ;;  %v1238_v17 = vpop.f32.mrf.mxu0  ;;  %v4366_v20 = vpop.f32.mrf.mxu1  ;;  %v2537_v44 = vld [vmem:[%s4794_s7 + $0x68] sm:$0xff] }
 0x20c   :  { %v1239_v14 = vadd.f32 %v3950_v63, %v1238_v17  ;;  %2546 = vmatpush.msrb.mxu3 %v2537_v44 }
 0x20d   :  { %v2032_v35 = vmax.f32 %v1611_v37, 0.0  ;;  %v2098_v51 = vmax.f32 %v1809_v45, 0.0 }
 0x20e   :  { %v1908_v43 = vmax.f32 %v1239_v14, 0.0  ;;  %2688 = vmatmul.msk.f32.gmra.mxu0 %vm301_vm1, %v104_v22 }
 0x20f   :  { %v2312_v15 = vadd.f32 %v2311_v39, %v2032_v35  ;;  %v2388_v38 = vadd.f32 %v2387_v13, %v2098_v51  ;;  %2813 = vmatmul.msk.f32.gmra.mxu2 %vm301_vm1, %v229_v46  ;;  %v106_v51 = vld [vmem:[%s4787_s0 + $0x218] sm:$0xff]  ;;  %s2919_s0 = smov [#allocation2]  }
 0x210   :  { %v2168_v62 = vadd.f32 %v2167_v52, %v1908_v43  ;;  %s2611_s17 = sshll.u32 %s2919_s0, 4  ;;  %s2612_s17 = int_to_ptr.vmem [resolvable:$true] %s2611_s17 }
 0x212   :  { %v1613_v28 = vpop.f32.mrf.mxu2  ;;  %v1811_v24 = vpop.f32.mrf.mxu3 }
 0x213   :  { %v1614_v60 = vadd.f32 %v3950_v63, %v1613_v28  ;;  %v1812_v54 = vadd.f32 %v3950_v63, %v1811_v24  ;;  %v1241_v50 = vpop.f32.mrf.mxu0  ;;  %v4379_v25 = vpop.f32.mrf.mxu1 }
 0x214   :  { %v1242_v4 = vadd.f32 %v3950_v63, %v1241_v50 }
 0x215   :  { %v2033_v39 = vmax.f32 %v1614_v60, 0.0  ;;  %v2099_v13 = vmax.f32 %v1812_v54, 0.0  ;;  %v1434_v54 = vadd.f32 %v3950_v63, %v4306_v49 }
 0x216   :  { %v1909_v59 = vmax.f32 %v1242_v4, 0.0  ;;  %2689 = vmatmul.msk.f32.gmra.mxu0 %vm301_vm1, %v105_v6 }
 0x217   :  { %v2313_v52 = vadd.f32 %v2312_v15, %v2033_v39  ;;  %v2389_v57 = vadd.f32 %v2388_v38, %v2099_v13 }
 0x218   :  { %v2169_v37 = vadd.f32 %v2168_v62, %v1909_v59 }
 0x21a   :  { %v1616_v45 = vpop.f32.mrf.mxu2  ;;  %v1814_v17 = vpop.f32.mrf.mxu3 }
 0x21b   :  { %v1617_v22 = vadd.f32 %v3950_v63, %v1616_v45  ;;  %v1815_v14 = vadd.f32 %v3950_v63, %v1814_v17  ;;  %v1244_v46 = vpop.f32.mrf.mxu0  ;;  %v1448_v35 = vpop.f32.mrf.mxu1 }
 0x21c   :  { %v1245_v43 = vadd.f32 %v3950_v63, %v1244_v46 }
 0x21d   :  { %v2034_v15 = vmax.f32 %v1617_v22, 0.0  ;;  %v2100_v38 = vmax.f32 %v1815_v14, 0.0  ;;  %v1973_v22 = vmax.f32 %v1434_v54, 0.0 }
 0x21e   :  { %v1910_v28 = vmax.f32 %v1245_v43, 0.0  ;;  %2690 = vmatmul.msk.f32.gmra.mxu0 %vm301_vm1, %v106_v51  ;;  %v1440_v43 = vadd.f32 %v3950_v63, %v4343_v21 }
 0x21f   :  { %v2314_v62 = vadd.f32 %v2313_v52, %v2034_v15  ;;  %v2390_v24 = vadd.f32 %v2389_v57, %v2100_v38  ;;  %v1437_v52 = vadd.f32 %v3950_v63, %v4326_v34  ;;  %v2243_v46 = vadd.f32 %v4302_v1, %v1973_v22  ;;  %v4412_v1 = vld [vmem:[%s4789_s2] ss:$0 sm:$0xff] }
 0x220   :  { %v2170_v60 = vadd.f32 %v2169_v37, %v1910_v28  ;;  %v1443_v21 = vadd.f32 %v4412_v1, %v4366_v20 }
 0x221   :  { %v1974_v51 = vmax.f32 %v1437_v52, 0.0 }
 0x222   :  { %v1619_v50 = vpop.f32.mrf.mxu2  ;;  %v1817_v6 = vpop.f32.mrf.mxu3  ;;  %v1976_v22 = vmax.f32 %v1443_v21, 0.0 }
 0x223   :  { %v1620_v4 = vadd.f32 %v3950_v63, %v1619_v50  ;;  %v1818_v39 = vadd.f32 %v3950_v63, %v1817_v6  ;;  %v1247_v13 = vpop.f32.mrf.mxu0  ;;  %v1451_v59 = vpop.f32.mrf.mxu1 }
 0x224   :  { %v1248_v44 = vadd.f32 %v3950_v63, %v1247_v13 }
 0x225   :  { %v2035_v45 = vmax.f32 %v1620_v4, 0.0  ;;  %v2101_v17 = vmax.f32 %v1818_v39, 0.0 }
 0x226   :  { %v1911_v57 = vmax.f32 %v1248_v44, 0.0 }
 0x227   :  { %v2315_v37 = vadd.f32 %v2314_v62, %v2035_v45  ;;  %v2391_v14 = vadd.f32 %v2390_v24, %v2101_v17  ;;  %v2244_v24 = vadd.f32 %v2243_v46, %v1974_v51 }
 0x228   :  { %v2171_v49 = vadd.f32 %v2170_v60, %v1911_v57  ;;  %v1975_v60 = vmax.f32 %v1440_v43, 0.0 }
 0x22a   :  { %v1622_v15 = vpop.f32.mrf.mxu2  ;;  %v1820_v38 = vpop.f32.mrf.mxu3  ;;  %v2245_v17 = vadd.f32 %v2244_v24, %v1975_v60 }
 0x22b   :  { %v1623_v28 = vadd.f32 %v3950_v63, %v1622_v15  ;;  %v1821_v50 = vadd.f32 %v3950_v63, %v1820_v38  ;;  %v1250_v54 = vpop.f32.mrf.mxu0  ;;  %v1454_v6 = vpop.f32.mrf.mxu1 }
 0x22c   :  { %v1251_v34 = vadd.f32 %v3950_v63, %v1250_v54  ;;  %v1446_v63 = vadd.f32 %v4412_v1, %v4379_v25  ;;  %v1452_v25 = vadd.f32 %v4412_v1, %v1451_v59  ;;  %v1455_v60 = vadd.f32 %v4412_v1, %v1454_v6  ;;  %v2491_v59 = vld [vmem:[%s4792_s5 + $0x40] sm:$0xff] }
 0x22d   :  { %v2036_v4 = vmax.f32 %v1623_v28, 0.0  ;;  %v2102_v62 = vmax.f32 %v1821_v50, 0.0  ;;  %v2536_v6 = vld [vmem:[%s4794_s7 + $0x60] sm:$0xff]  ;;  %2510 = vmatpush.msrb.mxu2 %v2491_v59 }
 0x22e   :  { %v1912_v39 = vmax.f32 %v1251_v34, 0.0  ;;  %2547 = vmatpush.msrb.mxu3 %v2536_v6 }
 0x22f   :  { %v2316_v13 = vadd.f32 %v2315_v37, %v2036_v4  ;;  %v2392_v44 = vadd.f32 %v2391_v14, %v2102_v62  ;;  %v2246_v37 = vadd.f32 %v2245_v17, %v1976_v22  ;;  %v1977_v14 = vmax.f32 %v1446_v63, 0.0 }
 0x230   :  { %v2172_v45 = vadd.f32 %v2171_v49, %v1912_v39  ;;  %v1449_v49 = vadd.f32 %v4412_v1, %v1448_v35  ;;  %v1979_v17 = vmax.f32 %v1452_v25, 0.0  ;;  %v1980_v63 = vmax.f32 %v1455_v60, 0.0 }
 0x231   :  { %v2247_v62 = vadd.f32 %v2246_v37, %v1977_v14 }
 0x232   :  { %v1625_v52 = vpop.f32.mrf.mxu2  ;;  %v1823_v57 = vpop.f32.mrf.mxu3  ;;  %v1978_v24 = vmax.f32 %v1449_v49, 0.0 }
 0x233   :  { %v1626_v46 = vadd.f32 %v4412_v1, %v1625_v52  ;;  %v1824_v51 = vadd.f32 %v4412_v1, %v1823_v57  ;;  %v1253_v43 = vpop.f32.mrf.mxu0  ;;  %v1457_v15 = vpop.f32.mrf.mxu1 }
 0x234   :  { %v1254_v38 = vadd.f32 %v4412_v1, %v1253_v43  ;;  %v1458_v22 = vadd.f32 %v4412_v1, %v1457_v15 }
 0x235   :  { %v2037_v20 = vmax.f32 %v1626_v46, 0.0  ;;  %v2103_v28 = vmax.f32 %v1824_v51, 0.0 }
 0x236   :  { %v1913_v50 = vmax.f32 %v1254_v38, 0.0  ;;  %v1981_v38 = vmax.f32 %v1458_v22, 0.0 }
 0x237   :  { %v2317_v54 = vadd.f32 %v2316_v13, %v2037_v20  ;;  %v4422_v34 = vadd.f32 %v2392_v44, %v2103_v28  ;;  %v2424_v13 = vld [vmem:[%s4790_s3 + $0x28] sm:$0xff]  ;;  %v2423_v28 = vld [vmem:[%s4790_s3 + $0x20] sm:$0xff] }
 0x238   :  { %v2173_v4 = vadd.f32 %v2172_v45, %v1913_v50  ;;  %2472 = vmatpush.msrb.mxu1 %v2424_v13  ;;  %v2248_v45 = vadd.f32 %v2247_v62, %v1978_v24  ;;  %v1467_v62 = vadd.f32 %v4412_v1, %v3262_v8  ;;  %v2490_v8 = vld [vmem:[%s4792_s5 + $0x38] sm:$0xff] }
 0x239   :  { %2511 = vmatpush.msrb.mxu2 %v2490_v8 }
 0x23a   :  { %v1628_v21 = vpop.f32.mrf.mxu2  ;;  %v2249_v15 = vadd.f32 %v2248_v45, %v1979_v17  ;;  %2473 = vmatpush.msrb.mxu1 %v2423_v28  ;;  %v1473_v17 = vadd.f32 %v4412_v1, %v3314_v26 }
 0x23b   :  { %v1629_v39 = vadd.f32 %v4412_v1, %v1628_v21  ;;  %v1256_v52 = vpop.f32.mrf.mxu0  ;;  %v1460_v57 = vpop.f32.mrf.mxu1 }
 0x23c   :  { %v1257_v35 = vadd.f32 %v4412_v1, %v1256_v52  ;;  %v1461_v51 = vadd.f32 %v4412_v1, %v1460_v57  ;;  %v2250_v37 = vadd.f32 %v2249_v15, %v1980_v63  ;;  %v1984_v57 = vmax.f32 %v1467_v62, 0.0 }
 0x23d   :  { %v2038_v44 = vmax.f32 %v1629_v39, 0.0  ;;  %v1986_v45 = vmax.f32 %v1473_v17, 0.0 }
 0x23e   :  { %v1914_v46 = vmax.f32 %v1257_v35, 0.0  ;;  %v1982_v14 = vmax.f32 %v1461_v51, 0.0  ;;  %v2251_v24 = vadd.f32 %v2250_v37, %v1981_v38  ;;  %v2535_v37 = vld [vmem:[%s4794_s7 + $0x58] sm:$0xff] }
 0x23f   :  { %v4439_v43 = vadd.f32 %v2317_v54, %v2038_v44  ;;  %2548 = vmatpush.msrb.mxu3 %v2535_v37 }
 0x240   :  { %v2174_v20 = vadd.f32 %v2173_v4, %v1914_v46  ;;  %v1470_v4 = vadd.f32 %v4412_v1, %v3286_v16  ;;  %v2252_v21 = vadd.f32 %v2251_v24, %v1982_v14 }
 0x242   :  { %v1631_v49 = vpop.f32.mrf.mxu2  ;;  %v1985_v13 = vmax.f32 %v1470_v4, 0.0 }
 0x243   :  { %v1259_v50 = vpop.f32.mrf.mxu0  ;;  %v1463_v25 = vpop.f32.mrf.mxu1  ;;  %v1632_v37 = vadd.f32 %v4412_v1, %v1631_v49 }
 0x244   :  { %v1260_v54 = vadd.f32 %v4412_v1, %v1259_v50  ;;  %v1464_v60 = vadd.f32 %v4412_v1, %v1463_v25 }
 0x246   :  { %v1915_v39 = vmax.f32 %v1260_v54, 0.0  ;;  %v1983_v52 = vmax.f32 %v1464_v60, 0.0  ;;  %v4463_v54 = vpop.f32.mrf.mxu3 }
 0x248   :  { %v2175_v22 = vadd.f32 %v2174_v20, %v1915_v39  ;;  %v2253_v35 = vadd.f32 %v2252_v21, %v1983_v52 }
 0x24a   :  { %v2254_v59 = vadd.f32 %v2253_v35, %v1984_v57  ;;  %v1634_v6 = vpop.f32.mrf.mxu2 }
 0x24b   :  { %v1262_v44 = vpop.f32.mrf.mxu0 }
 0x24c   :  { %v2255_v16 = vadd.f32 %v2254_v59, %v1985_v13  ;;  %v1263_v63 = vadd.f32 %v4412_v1, %v1262_v44  ;;  %v2422_v44 = vld [vmem:[%s4790_s3 + $0x18] sm:$0xff] }
 0x24d   :  { %2474 = vmatpush.msrb.mxu1 %v2422_v44 }
 0x24e   :  { %v4456_v46 = vadd.f32 %v2255_v16, %v1986_v45  ;;  %v1916_v51 = vmax.f32 %v1263_v63, 0.0  ;;  %v4466_v17 = vpop.f32.mrf.mxu3 }
 0x250   :  { %v2176_v15 = vadd.f32 %v2175_v22, %v1916_v51 }
 0x252   :  { %v1637_v26 = vpop.f32.mrf.mxu2 }
 0x253   :  { %v1265_v38 = vpop.f32.mrf.mxu0 }
 0x254   :  { %v1266_v20 = vadd.f32 %v4412_v1, %v1265_v38 }
 0x256   :  { %v1917_v28 = vmax.f32 %v1266_v20, 0.0  ;;  %v4472_v63 = vpop.f32.mrf.mxu3  ;;  %v2489_v20 = vld [vmem:[%s4792_s5 + $0x30] sm:$0xff] }
 0x257   :  { %2512 = vmatpush.msrb.mxu2 %v2489_v20 }
 0x258   :  { %v2177_v14 = vadd.f32 %v2176_v15, %v1917_v28 }
 0x25a   :  { %v1640_v50 = vpop.f32.mrf.mxu2 }
 0x25b   :  { %v1268_v25 = vpop.f32.mrf.mxu0 }
 0x25c   :  { %v1269_v62 = vadd.f32 %v4412_v1, %v1268_v25 }
 0x25e   :  { %v1918_v24 = vmax.f32 %v1269_v62, 0.0  ;;  %v1635_v62 = vadd.f32 %v4412_v1, %v1634_v6 }
 0x260   :  { %v2178_v60 = vadd.f32 %v2177_v14, %v1918_v24  ;;  %v4481_v24 = vpop.f32.mrf.mxu3 }
 0x262   :  { %v1643_v4 = vpop.f32.mrf.mxu2 }
 0x263   :  { %v1271_v21 = vpop.f32.mrf.mxu0  ;;  %v1644_v6 = vadd.f32 %v4412_v1, %v1643_v4  ;;  %v2534_v4 = vld [vmem:[%s4794_s7 + $0x50] sm:$0xff] }
 0x264   :  { %v1272_v39 = vadd.f32 %v4412_v1, %v1271_v21  ;;  %v2039_v21 = vmax.f32 %v1632_v37, 0.0  ;;  %2549 = vmatpush.msrb.mxu3 %v2534_v4 }
 0x266   :  { %v1919_v52 = vmax.f32 %v1272_v39, 0.0  ;;  %v1638_v39 = vadd.f32 %v4412_v1, %v1637_v26  ;;  %v1098_v26 = vadd.f32 %v4412_v1, %v3288_v18 }
 0x268   :  { %v2179_v57 = vadd.f32 %v2178_v60, %v1919_v52 }
 0x26a   :  { %v1646_v22 = vpop.f32.mrf.mxu2 }
 0x26b   :  { %v1274_v35 = vpop.f32.mrf.mxu0 }
 0x26c   :  { %v1275_v8 = vadd.f32 %v4412_v1, %v1274_v35  ;;  %v1641_v35 = vadd.f32 %v4412_v1, %v1640_v50  ;;  %v1647_v50 = vadd.f32 %v4412_v1, %v1646_v22  ;;  %v1104_v22 = vadd.f32 %v4412_v1, %v3338_v41 }
 0x26e   :  { %v1920_v13 = vmax.f32 %v1275_v8, 0.0  ;;  %v1095_v8 = vadd.f32 %v4412_v1, %v3266_v10  ;;  %v1101_v10 = vadd.f32 %v4412_v1, %v3317_v30 }
 0x270   :  { %v2180_v59 = vadd.f32 %v2179_v57, %v1920_v13  ;;  %v2040_v57 = vmax.f32 %v1635_v62, 0.0  ;;  %v2319_v13 = vadd.f32 %v4439_v43, %v2039_v21  ;;  %v2043_v43 = vmax.f32 %v1644_v6, 0.0 }
 0x271   :  { %v2044_v62 = vmax.f32 %v1647_v50, 0.0  ;;  %v1862_v21 = vmax.f32 %v1101_v10, 0.0  ;;  %v1863_v6 = vmax.f32 %v1104_v22, 0.0 }
 0x272   :  { %v1649_v45 = vpop.f32.mrf.mxu2 }
 0x273   :  { %v1277_v16 = vpop.f32.mrf.mxu0  ;;  %v1650_v37 = vadd.f32 %v4412_v1, %v1649_v45 }
 0x274   :  { %v1278_v51 = vadd.f32 %v4412_v1, %v1277_v16  ;;  %v1092_v16 = vadd.f32 %v4412_v1, %v3242_v2  ;;  %v2421_v2 = vld [vmem:[%s4790_s3 + $0x10] sm:$0xff] }
 0x275   :  { %2475 = vmatpush.msrb.mxu1 %v2421_v2 }
 0x276   :  { %v1921_v15 = vmax.f32 %v1278_v51, 0.0  ;;  %v2320_v51 = vadd.f32 %v2319_v13, %v2040_v57  ;;  %v1859_v18 = vmax.f32 %v1092_v16, 0.0  ;;  %v1110_v16 = vadd.f32 %v4412_v1, %v3383_v7 }
 0x277   :  { %v1665_v7 = vadd.f32 %v4412_v1, %v3264_v9 }
 0x278   :  { %v2181_v38 = vadd.f32 %v2180_v59, %v1921_v15  ;;  %v2041_v59 = vmax.f32 %v1638_v39, 0.0  ;;  %v2042_v15 = vmax.f32 %v1641_v35, 0.0  ;;  %v1107_v39 = vadd.f32 %v4412_v1, %v3361_v55 }
 0x279   :  { %v1113_v55 = vadd.f32 %v4412_v1, %v3405_v32  ;;  %v1119_v32 = vadd.f32 %v4412_v1, %v3449_v0 }
 0x27a   :  { %v1652_v28 = vpop.f32.mrf.mxu2  ;;  %v2321_v20 = vadd.f32 %v2320_v51, %v2041_v59  ;;  %v1864_v50 = vmax.f32 %v1107_v39, 0.0  ;;  %v1122_v39 = vadd.f32 %v4412_v1, %v3471_v27  ;;  %v1128_v27 = vadd.f32 %v4412_v1, %v3515_v5 }
 0x27b   :  { %v1280_v14 = vpop.f32.mrf.mxu0  ;;  %v1653_v45 = vadd.f32 %v4412_v1, %v1652_v28  ;;  %v1866_v22 = vmax.f32 %v1113_v55, 0.0  ;;  %v1868_v0 = vmax.f32 %v1119_v32, 0.0 }
 0x27c   :  { %v1281_v25 = vadd.f32 %v4412_v1, %v1280_v14  ;;  %v1861_v14 = vmax.f32 %v1098_v26, 0.0  ;;  %v2322_v30 = vadd.f32 %v2321_v20, %v2042_v15 }
 0x27d   :  { %v2046_v51 = vmax.f32 %v1653_v45, 0.0 }
 0x27e   :  { %v1922_v60 = vmax.f32 %v1281_v25, 0.0  ;;  %v4507_v25 = vpop.f32.mrf.mxu3  ;;  %v2323_v35 = vadd.f32 %v2322_v30, %v2043_v43  ;;  %v1865_v43 = vmax.f32 %v1110_v16, 0.0  ;;  %v1125_v16 = vadd.f32 %v4412_v1, %v3493_v47 }
 0x280   :  { %v4484_v52 = vadd.f32 %v2181_v38, %v1922_v60  ;;  %v1860_v38 = vmax.f32 %v1095_v8, 0.0  ;;  %v2045_v8 = vmax.f32 %v1650_v37, 0.0  ;;  %v2324_v26 = vadd.f32 %v2323_v35, %v2044_v62 }
 0x282   :  { %v1655_v49 = vpop.f32.mrf.mxu2  ;;  %v2115_v60 = vadd.f32 %v1860_v38, %v1859_v18  ;;  %v2325_v38 = vadd.f32 %v2324_v26, %v2045_v8 }
 0x283   :  { %v1283_v44 = vpop.f32.mrf.mxu0  ;;  %v1656_v13 = vadd.f32 %v4412_v1, %v1655_v49  ;;  %v1116_v49 = vadd.f32 %v4412_v1, %v3427_v48 }
 0x284   :  { %v2116_v41 = vadd.f32 %v2115_v60, %v1861_v14  ;;  %v2326_v37 = vadd.f32 %v2325_v38, %v2046_v51  ;;  %v1284_v35 = vadd.f32 %v4412_v1, %v1283_v44  ;;  %v1296_v44 = vadd.f32 %v4412_v1, %v3244_v3 }
 0x285   :  { %v2047_v10 = vmax.f32 %v1656_v13, 0.0  ;;  %v2050_v13 = vmax.f32 %v1665_v7, 0.0  ;;  %v1134_v7 = vadd.f32 %v4412_v1, %v3559_v58  ;;  %v1140_v58 = vadd.f32 %v4412_v1, %v3603_v53 }
 0x286   :  { %v2117_v15 = vadd.f32 %v2116_v41, %v1862_v21  ;;  %v4522_v18 = vpop.f32.mrf.mxu3  ;;  %v1867_v21 = vmax.f32 %v1116_v49, 0.0  ;;  %v1146_v53 = vadd.f32 %v4412_v1, %v3650_v61  ;;  %v2487_v61 = vld [vmem:[%s4792_s5 + $0x20] sm:$0xff] }
 0x287   :  { %v2327_v30 = vadd.f32 %v2326_v37, %v2047_v10  ;;  %v1870_v10 = vmax.f32 %v1125_v16, 0.0  ;;  %v1299_v37 = vadd.f32 %v4412_v1, %v3268_v11  ;;  %v1305_v11 = vadd.f32 %v4412_v1, %v3319_v31 }
 0x288   :  { %v2118_v20 = vadd.f32 %v2117_v15, %v1863_v6  ;;  %v1923_v15 = vmax.f32 %v1284_v35, 0.0  ;;  %v1311_v31 = vadd.f32 %v4412_v1, %v3363_v56  ;;  %v2420_v56 = vld [vmem:[%s4790_s3 + $0x8] sm:$0xff] }
 0x289   :  { %2476 = vmatpush.msrb.mxu1 %v2420_v56 }
 0x28a   :  { %v1658_v57 = vpop.f32.mrf.mxu2  ;;  %v2119_v2 = vadd.f32 %v2118_v20, %v1864_v50  ;;  %v1131_v20 = vadd.f32 %v4412_v1, %v3537_v36 }
 0x28b   :  { %v1286_v59 = vpop.f32.mrf.mxu0  ;;  %v1659_v28 = vadd.f32 %v4412_v1, %v1658_v57 }
 0x28c   :  { %v2120_v60 = vadd.f32 %v2119_v2, %v1865_v43  ;;  %v1287_v48 = vadd.f32 %v4412_v1, %v1286_v59  ;;  %v1869_v59 = vmax.f32 %v1122_v39, 0.0  ;;  %v1872_v32 = vmax.f32 %v1131_v20, 0.0 }
 0x28d   :  { %v2048_v4 = vmax.f32 %v1659_v28, 0.0  ;;  %v1877_v20 = vmax.f32 %v1146_v53, 0.0 }
 0x28e   :  { %v2121_v41 = vadd.f32 %v2120_v60, %v1866_v22  ;;  %v1924_v26 = vmax.f32 %v1287_v48, 0.0  ;;  %v4542_v47 = vpop.f32.mrf.mxu3  ;;  %v1302_v22 = vadd.f32 %v4412_v1, %v3290_v19  ;;  %v1873_v48 = vmax.f32 %v1134_v7, 0.0 }
 0x28f   :  { %v2328_v9 = vadd.f32 %v2327_v30, %v2048_v4  ;;  %v1871_v4 = vmax.f32 %v1128_v27, 0.0  ;;  %v1137_v30 = vadd.f32 %v4412_v1, %v3581_v23  ;;  %v1308_v19 = vadd.f32 %v4412_v1, %v3340_v42  ;;  %v2488_v42 = vld [vmem:[%s4792_s5 + $0x28] sm:$0xff] }
 0x290   :  { %v2122_v51 = vadd.f32 %v2121_v41, %v1867_v21  ;;  %v2189_v43 = vadd.f32 %v1924_v26, %v1923_v15  ;;  %v1929_v39 = vmax.f32 %v1302_v22, 0.0  ;;  %v1143_v23 = vadd.f32 %v4412_v1, %v3628_v29  ;;  %v2533_v29 = vld [vmem:[%s4794_s7 + $0x48] sm:$0xff]  ;;  %2513 = vmatpush.msrb.mxu2 %v2488_v42 }
 0x291   :  { %v1875_v41 = vmax.f32 %v1140_v58, 0.0  ;;  %v1931_v16 = vmax.f32 %v1308_v19, 0.0  ;;  %v1314_v26 = vadd.f32 %v4412_v1, %v3385_v12  ;;  %2550 = vmatpush.msrb.mxu3 %v2533_v29  ;;  %v4840_v58 = vld [vmem:[#allocation7_spill] sm:$0xff]  ;;  %v4844_v29 = vld [vmem:[#allocation25_spill] sm:$0xff] }
 0x292   :  { %v1661_v14 = vpop.f32.mrf.mxu2  ;;  %v2123_v55 = vadd.f32 %v2122_v51, %v1868_v0  ;;  %v2419_v51 = vld [vmem:[%s4790_s3] sm:$0xff]  ;;  %v1876_v15 = vmax.f32 %v1143_v23, 0.0  ;;  %2514 = vmatpush.msrb.mxu2 %v2487_v61  ;;  %v1164_v56 = vadd.f32 %v4412_v1, %v4844_v29  ;;  %v4845_v61 = vld [vmem:[#allocation10_spill] sm:$0xff] }
 0x293   :  { %v1662_v62 = vadd.f32 %v4412_v1, %v1661_v14  ;;  %v1289_v45 = vpop.f32.mrf.mxu0  ;;  %v1927_v14 = vmax.f32 %v1296_v44, 0.0  ;;  %v2486_v44 = vld [vmem:[%s4792_s5 + $0x18] sm:$0xff]  ;;  %2477 = vmatpush.msrb.mxu1 %v2419_v51  ;;  %v1335_v51 = vadd.f32 %v4412_v1, %v4845_v61 }
 0x294   :  { %v1290_v8 = vadd.f32 %v4412_v1, %v1289_v45  ;;  %v2124_v5 = vadd.f32 %v2123_v55, %v1869_v59  ;;  %v1928_v45 = vmax.f32 %v1299_v37, 0.0  ;;  %v2532_v59 = vld [vmem:[%s4794_s7 + $0x40] sm:$0xff]  ;;  %v1932_v55 = vmax.f32 %v1311_v31, 0.0  ;;  %2515 = vmatpush.msrb.mxu2 %v2486_v44 }
 0x295   :  { %v2049_v57 = vmax.f32 %v1662_v62, 0.0  ;;  %2551 = vmatpush.msrb.mxu3 %v2532_v59  ;;  %v4842_v31 = vld [vmem:[#allocation8_spill] sm:$0xff]  ;;  %v1827_v59 = vadd.f32 %v4412_v1, %v4463_v54 }
 0x296   :  { %v1925_v50 = vmax.f32 %v1290_v8, 0.0  ;;  %v2125_v36 = vadd.f32 %v2124_v5, %v1870_v10  ;;  %v1930_v8 = vmax.f32 %v1305_v11, 0.0  ;;  %v4565_v0 = vpop.f32.mrf.mxu3  ;;  %v4836_v5 = vld [vmem:[#allocation5_spill] sm:$0xff] }
 0x297   :  { %v2329_v6 = vadd.f32 %v2328_v9, %v2049_v57  ;;  %v1874_v57 = vmax.f32 %v1137_v30, 0.0 }
 0x298   :  { %v2190_v3 = vadd.f32 %v2189_v43, %v1925_v50  ;;  %v2126_v60 = vadd.f32 %v2125_v36, %v1871_v4  ;;  %v1149_v50 = vadd.f32 %v4412_v1, %v3672_v40  ;;  %v4835_v43 = vld [vmem:[#allocation17_spill] sm:$0xff]  ;;  %v1933_v40 = vmax.f32 %v1314_v26, 0.0  ;;  %v4838_v36 = vld [vmem:[#allocation6_spill] sm:$0xff] }
 0x299   :  { %v4534_v28 = vadd.f32 %v2329_v6, %v2050_v13  ;;  %v1320_v4 = vadd.f32 %v4412_v1, %v4836_v5 }
 0x29a   :  { %v2127_v9 = vadd.f32 %v2126_v60, %v1872_v32  ;;  %v1323_v32 = vadd.f32 %v4412_v1, %v4838_v36  ;;  %v4850_v36 = vld [vmem:[#allocation31_spill] sm:$0xff] }
 0x29b   :  { %v1292_v38 = vpop.f32.mrf.mxu0 }
 0x29c   :  { %v1293_v49 = vadd.f32 %v4412_v1, %v1292_v38  ;;  %v2128_v13 = vadd.f32 %v2127_v9, %v1873_v48  ;;  %v1317_v38 = vadd.f32 %v4412_v1, %v3407_v33  ;;  %v1935_v48 = vmax.f32 %v1320_v4, 0.0  ;;  %v4841_v9 = vld [vmem:[#allocation23_spill] sm:$0xff] }
 0x29d   :  { %v1940_v4 = vmax.f32 %v1335_v51, 0.0 }
 0x29e   :  { %v1926_v2 = vmax.f32 %v1293_v49, 0.0  ;;  %v2129_v27 = vadd.f32 %v2128_v13, %v1874_v57  ;;  %v1152_v49 = vadd.f32 %v4412_v1, %v4835_v43  ;;  %v1934_v22 = vmax.f32 %v1317_v38, 0.0  ;;  %v4608_v23 = vpop.f32.mrf.mxu3 }
 0x29f   :  { %v1161_v57 = vadd.f32 %v4412_v1, %v4841_v9  ;;  %v1329_v13 = vadd.f32 %v4412_v1, %v4842_v31  ;;  %v1830_v43 = vadd.f32 %v4412_v1, %v4466_v17 }
 0x2a0   :  { %v2191_v62 = vadd.f32 %v2190_v3, %v1926_v2  ;;  %v2130_v10 = vadd.f32 %v2129_v27, %v1875_v41  ;;  %v1878_v3 = vmax.f32 %v1149_v50, 0.0  ;;  %v4837_v2 = vld [vmem:[#allocation19_spill] sm:$0xff]  ;;  %v4843_v41 = vld [vmem:[#allocation9_spill] sm:$0xff] }
 0x2a1   :  { %v1332_v53 = vadd.f32 %v4412_v1, %v4843_v41  ;;  %v4846_v50 = vld [vmem:[#allocation27_spill] sm:$0xff]  ;;  %v4853_v41 = vld [vmem:[#allocation34_spill] sm:$0xff] }
 0x2a2   :  { %v2192_v21 = vadd.f32 %v2191_v62, %v1927_v14  ;;  %v2131_v7 = vadd.f32 %v2130_v10, %v1876_v15  ;;  %v1155_v14 = vadd.f32 %v4412_v1, %v4837_v2  ;;  %v1879_v62 = vmax.f32 %v1152_v49, 0.0  ;;  %v4847_v10 = vld [vmem:[#allocation11_spill] sm:$0xff] }
 0x2a3   :  { %v1882_v15 = vmax.f32 %v1161_v57, 0.0  ;;  %v1939_v38 = vmax.f32 %v1332_v53, 0.0  ;;  %v2104_v2 = vmax.f32 %v1827_v59, 0.0  ;;  %v1179_v53 = vadd.f32 %v4412_v1, %v4853_v41  ;;  %v4855_v59 = vld [vmem:[#allocation35_spill] sm:$0xff] }
 0x2a4   :  { %v2193_v35 = vadd.f32 %v2192_v21, %v1928_v45  ;;  %v2132_v30 = vadd.f32 %v2131_v7, %v1877_v20  ;;  %v4839_v45 = vld [vmem:[#allocation21_spill] sm:$0xff]  ;;  %v1326_v21 = vadd.f32 %v4412_v1, %v4840_v58  ;;  %v1880_v19 = vmax.f32 %v1155_v14, 0.0  ;;  %v4849_v7 = vld [vmem:[#allocation12_spill] sm:$0xff] }
 0x2a5   :  { %v1158_v11 = vadd.f32 %v4412_v1, %v4839_v45  ;;  %v1338_v20 = vadd.f32 %v4412_v1, %v4847_v10  ;;  %v1833_v14 = vadd.f32 %v4412_v1, %v4472_v63  ;;  %v2394_v57 = vadd.f32 %v4422_v34, %v2104_v2  ;;  %v4857_v10 = vld [vmem:[#allocation36_spill] sm:$0xff] }
 0x2a6   :  { %v2194_v6 = vadd.f32 %v2193_v35, %v1929_v39  ;;  %v2133_v39 = vadd.f32 %v2132_v30, %v1878_v3  ;;  %v1937_v26 = vmax.f32 %v1326_v21, 0.0  ;;  %v1341_v3 = vadd.f32 %v4412_v1, %v4849_v7  ;;  %v4852_v21 = vld [vmem:[#allocation33_spill] sm:$0xff]  ;;  %v1853_v63 = vpop.f32.mrf.mxu3 }
 0x2a7   :  { %v1881_v42 = vmax.f32 %v1158_v11, 0.0  ;;  %v1941_v30 = vmax.f32 %v1338_v20, 0.0  ;;  %v2105_v11 = vmax.f32 %v1830_v43, 0.0  ;;  %v1185_v20 = vadd.f32 %v4412_v1, %v4857_v10 }
 0x2a8   :  { %v2195_v12 = vadd.f32 %v2194_v6, %v1930_v8  ;;  %v1936_v8 = vmax.f32 %v1323_v32, 0.0  ;;  %v2134_v6 = vadd.f32 %v2133_v39, %v1879_v62  ;;  %v1173_v32 = vadd.f32 %v4412_v1, %v4850_v36  ;;  %v4851_v62 = vld [vmem:[#allocation13_spill] sm:$0xff] }
 0x2a9   :  { %v1344_v45 = vadd.f32 %v4412_v1, %v4851_v62  ;;  %v1176_v39 = vadd.f32 %v4412_v1, %v4852_v21  ;;  %v1942_v9 = vmax.f32 %v1341_v3, 0.0 }
 0x2aa   :  { %v2196_v37 = vadd.f32 %v2195_v12, %v1931_v16  ;;  %v2135_v27 = vadd.f32 %v2134_v6, %v1880_v19  ;;  %v1167_v12 = vadd.f32 %v4412_v1, %v4846_v50  ;;  %v1845_v50 = vadd.f32 %v4412_v1, %v4542_v47 }
 0x2ab   :  { %v1943_v6 = vmax.f32 %v1344_v45, 0.0  ;;  %v1887_v61 = vmax.f32 %v1176_v39, 0.0 }
 0x2ac   :  { %v2197_v33 = vadd.f32 %v2196_v37, %v1932_v55  ;;  %v1938_v55 = vmax.f32 %v1329_v13, 0.0  ;;  %v2136_v49 = vadd.f32 %v2135_v27, %v1881_v42  ;;  %v1883_v37 = vmax.f32 %v1164_v56, 0.0 }
 0x2ad   :  { %v1886_v13 = vmax.f32 %v1173_v32, 0.0  ;;  %v2395_v42 = vadd.f32 %v2394_v57, %v2105_v11  ;;  %v1842_v56 = vadd.f32 %v4412_v1, %v4522_v18  ;;  %v2110_v2 = vmax.f32 %v1845_v50, 0.0 }
 0x2ae   :  { %v2198_v60 = vadd.f32 %v2197_v33, %v1933_v40  ;;  %v4848_v40 = vld [vmem:[#allocation29_spill] sm:$0xff]  ;;  %v2137_v33 = vadd.f32 %v2136_v49, %v1882_v15  ;;  %v1854_v11 = vadd.f32 %v4412_v1, %v1853_v63  ;;  %v4862_v63 = vld [vmem:[#allocation24_spill] sm:$0xff] }
 0x2af   :  { %v1170_v5 = vadd.f32 %v4412_v1, %v4848_v40  ;;  %v2109_v49 = vmax.f32 %v1842_v56, 0.0  ;;  %v2183_v56 = vrot.slane %v4484_v52, 4 }
 0x2b0   :  { %v2199_v35 = vadd.f32 %v2198_v60, %v1934_v22  ;;  %v1884_v22 = vmax.f32 %v1167_v12, 0.0  ;;  %v1836_v60 = vadd.f32 %v4412_v1, %v4481_v24  ;;  %v4856_v12 = vld [vmem:[#allocation15_spill] sm:$0xff] }
 0x2b1   :  { %v1885_v58 = vmax.f32 %v1170_v5, 0.0  ;;  %v4858_v5 = vld [vmem:[#allocation16_spill] sm:$0xff]  ;;  %v2184_v10 = vadd.f32 %v2183_v56, %v4484_v52 }
 0x2b2   :  { %v2200_v16 = vadd.f32 %v2199_v35, %v1935_v48  ;;  %v2138_v48 = vadd.f32 %v2137_v33, %v1883_v37  ;;  %v2106_v35 = vmax.f32 %v1833_v14, 0.0  ;;  %v2107_v29 = vmax.f32 %v1836_v60, 0.0  ;;  %v2483_v52 = vld [vmem:[%s4792_s5] sm:$0xff] }
 0x2b3   :  { %v1848_v37 = vadd.f32 %v4412_v1, %v4565_v0  ;;  %v1851_v14 = vadd.f32 %v4412_v1, %v4608_v23  ;;  %v1890_v0 = vmax.f32 %v1185_v20, 0.0 }
 0x2b4   :  { %v2201_v44 = vadd.f32 %v2200_v16, %v1936_v8  ;;  %v1839_v8 = vadd.f32 %v4412_v1, %v4507_v25  ;;  %v2139_v31 = vadd.f32 %v2138_v48, %v1884_v22  ;;  %v4854_v16 = vld [vmem:[#allocation14_spill] sm:$0xff]  ;;  %v1182_v25 = vadd.f32 %v4412_v1, %v4855_v59  ;;  %v4860_v48 = vld [vmem:[#allocation20_spill] sm:$0xff] }
 0x2b5   :  { %v2396_v27 = vadd.f32 %v2395_v42, %v2106_v35  ;;  %v4859_v22 = vld [vmem:[#allocation18_spill] sm:$0xff]  ;;  %v2111_v45 = vmax.f32 %v1848_v37, 0.0  ;;  %v2112_v23 = vmax.f32 %v1851_v14, 0.0  ;;  %v4867_v14 = vld [vmem:[#allocation32_spill] sm:$0xff] }
 0x2b6   :  { %v2202_v54 = vadd.f32 %v2201_v44, %v1937_v26  ;;  %v1347_v26 = vadd.f32 %v4412_v1, %v4854_v16  ;;  %v2140_v34 = vadd.f32 %v2139_v31, %v1885_v58  ;;  %v2108_v15 = vmax.f32 %v1839_v8, 0.0  ;;  %v4861_v35 = vld [vmem:[#allocation22_spill] sm:$0xff] }
 0x2b7   :  { %v1350_v44 = vadd.f32 %v4412_v1, %v4856_v12  ;;  %v2397_v43 = vadd.f32 %v2396_v27, %v2107_v29  ;;  %v1889_v7 = vmax.f32 %v1182_v25, 0.0  ;;  %v1356_v36 = vadd.f32 %v4412_v1, %v4859_v22  ;;  %v4865_v37 = vld [vmem:[#allocation30_spill] sm:$0xff]  ;;  %v4868_v22 = vld [vmem:[#allocation37_spill] sm:$0xff] }
 0x2b8   :  { %v2203_v17 = vadd.f32 %v2202_v54, %v1938_v55  ;;  %v2141_v55 = vadd.f32 %v2140_v34, %v1886_v13  ;;  %v1944_v40 = vmax.f32 %v1347_v26, 0.0  ;;  %v1353_v54 = vadd.f32 %v4412_v1, %v4858_v5  ;;  %v4863_v34 = vld [vmem:[#allocation26_spill] sm:$0xff] }
 0x2b9   :  { %v2398_v3 = vadd.f32 %v2397_v43, %v2108_v15  ;;  %v1945_v33 = vmax.f32 %v1350_v44, 0.0  ;;  %v1359_v58 = vadd.f32 %v4412_v1, %v4860_v48  ;;  %v1947_v57 = vmax.f32 %v1356_v36, 0.0  ;;  %v4864_v15 = vld [vmem:[#allocation28_spill] sm:$0xff]  ;;  %v2531_v44 = vld [vmem:[%s4794_s7 + $0x38] sm:$0xff]  ;;  %v2484_v43 = vld [vmem:[%s4792_s5 + $0x8] sm:$0xff] }
 0x2ba   :  { %v2204_v19 = vadd.f32 %v2203_v17, %v1939_v38  ;;  %v1888_v38 = vmax.f32 %v1179_v53, 0.0  ;;  %v1856_v17 = vpop.f32.mrf.mxu3  ;;  %v1946_v60 = vmax.f32 %v1353_v54, 0.0  ;;  %v1362_v8 = vadd.f32 %v4412_v1, %v4861_v35  ;;  %2552 = vmatpush.msrb.mxu3 %v2531_v44  ;;  %v4866_v5 = vld [vmem:[#allocation38_spill] sm:$0xff] }
 0x2bb   :  { %v2399_v62 = vadd.f32 %v2398_v3, %v2109_v49  ;;  %v2113_v53 = vmax.f32 %v1854_v11, 0.0  ;;  %v1371_v50 = vadd.f32 %v4412_v1, %v4864_v15  ;;  %v2294_v54 = vrot.slane %v4866_v5, 4 }
 0x2bc   :  { %v2205_v24 = vadd.f32 %v2204_v19, %v1940_v4  ;;  %v2142_v4 = vadd.f32 %v2141_v55, %v1887_v61  ;;  %v1949_v26 = vmax.f32 %v1362_v8, 0.0  ;;  %v1368_v61 = vadd.f32 %v4412_v1, %v4863_v34  ;;  %v2485_v55 = vld [vmem:[%s4792_s5 + $0x10] sm:$0xff] }
 0x2bd   :  { %v2400_v19 = vadd.f32 %v2399_v62, %v2110_v2  ;;  %2516 = vmatpush.msrb.mxu2 %v2485_v55  ;;  %v2331_v3 = vrot.slane %v4534_v28, 4  ;;  %v1952_v2 = vmax.f32 %v1371_v50, 0.0  ;;  %v2368_v36 = vrot.slane %v4868_v22, 4 }
 0x2be   :  { %v2206_v51 = vadd.f32 %v2205_v24, %v1941_v30  ;;  %v2143_v32 = vadd.f32 %v2142_v4, %v1888_v38  ;;  %v1948_v24 = vmax.f32 %v1359_v58, 0.0  ;;  %v2530_v38 = vld [vmem:[%s4794_s7 + $0x30] sm:$0xff]  ;;  %v1951_v49 = vmax.f32 %v1368_v61, 0.0 }
 0x2bf   :  { %v2401_v41 = vadd.f32 %v2400_v19, %v2111_v45  ;;  %2553 = vmatpush.msrb.mxu3 %v2530_v38  ;;  %2517 = vmatpush.msrb.mxu2 %v2484_v43  ;;  %v2295_v11 = vadd.f32 %v2294_v54, %v4866_v5 }
 0x2c0   :  { %v2207_v18 = vadd.f32 %v2206_v51, %v1942_v9  ;;  %v2144_v39 = vadd.f32 %v2143_v32, %v1889_v7  ;;  %v1857_v9 = vadd.f32 %v4412_v1, %v1856_v17  ;;  %v2528_v17 = vld [vmem:[%s4794_s7 + $0x20] sm:$0xff] }
 0x2c1   :  { %v2402_v29 = vadd.f32 %v2401_v41, %v2112_v23  ;;  %2518 = vmatpush.msrb.mxu2 %v2483_v52 }
 0x2c2   :  { %v2208_v47 = vadd.f32 %v2207_v18, %v1943_v6  ;;  %v2145_v13 = vadd.f32 %v2144_v39, %v1890_v0  ;;  %v1365_v6 = vadd.f32 %v4412_v1, %v4862_v63  ;;  %v2114_v16 = vmax.f32 %v1857_v9, 0.0 }
 0x2c3   :  { %v2403_v25 = vadd.f32 %v2402_v29, %v2113_v53  ;;  %v2257_v18 = vrot.slane %v4456_v46, 4  ;;  %v2185_v0 = vrot.slane %v2184_v10, 2 }
 0x2c4   :  { %v2209_v30 = vadd.f32 %v2208_v47, %v1944_v40  ;;  %v2146_v59 = vrot.slane %v2145_v13, 4  ;;  %v1950_v27 = vmax.f32 %v1365_v6, 0.0  ;;  %v1374_v40 = vadd.f32 %v4412_v1, %v4865_v37  ;;  %v2529_v47 = vld [vmem:[%s4794_s7 + $0x28] sm:$0xff] }
 0x2c5   :  { %v2404_v20 = vadd.f32 %v2403_v25, %v2114_v16  ;;  %2554 = vmatpush.msrb.mxu3 %v2529_v47  ;;  %v2186_v23 = vadd.f32 %v2185_v0, %v2184_v10 }
 0x2c6   :  { %v2210_v21 = vadd.f32 %v2209_v30, %v1945_v33  ;;  %v2147_v7 = vadd.f32 %v2146_v59, %v2145_v13  ;;  %v1377_v33 = vadd.f32 %v4412_v1, %v4867_v14  ;;  %v2258_v30 = vadd.f32 %v2257_v18, %v4456_v46 }
 0x2c7   :  { %v2405_v62 = vrot.slane %v2404_v20, 4  ;;  %v1953_v45 = vmax.f32 %v1374_v40, 0.0  ;;  %v2332_v1 = vadd.f32 %v2331_v3, %v4534_v28  ;;  %2555 = vmatpush.msrb.mxu3 %v2528_v17  ;;  %v2296_v46 = vrot.slane %v2295_v11, 2  ;;  %v2524_v17 = vld [vmem:[%s4794_s7] sm:$0xff] }
 0x2c8   :  { %v2211_v31 = vadd.f32 %v2210_v21, %v1946_v60  ;;  %v2148_v48 = vrot.slane %v2147_v7, 2  ;;  %v1954_v58 = vmax.f32 %v1377_v33, 0.0  ;;  %v2369_v21 = vadd.f32 %v2368_v36, %v4868_v22  ;;  %v2527_v22 = vld [vmem:[%s4794_s7 + $0x18] sm:$0xff]  ;;  %v2526_v36 = vld [vmem:[%s4794_s7 + $0x10] sm:$0xff] }
 0x2c9   :  { %v2259_v19 = vrot.slane %v2258_v30, 2  ;;  %v2406_v9 = vadd.f32 %v2405_v62, %v2404_v20  ;;  %v2333_v8 = vrot.slane %v2332_v1, 2  ;;  %v2187_v53 = vrot.slane %v2186_v23, 1  ;;  %2556 = vmatpush.msrb.mxu3 %v2527_v22 }
 0x2ca   :  { %v2212_v42 = vadd.f32 %v2211_v31, %v1947_v57  ;;  %v2149_v35 = vadd.f32 %v2148_v48, %v2147_v7  ;;  %v2370_v31 = vrot.slane %v2369_v21, 2  ;;  %v2297_v63 = vadd.f32 %v2296_v46, %v2295_v11  ;;  %v2580_v11 = vld [vmem:[%s4796_s9 + $0x78] sm:$0xff]  ;;  %v2578_v48 = vld [vmem:[%s4796_s9 + $0x68] sm:$0xff] }
 0x2cb   :  { %v2260_v41 = vadd.f32 %v2259_v19, %v2258_v30  ;;  %2557 = vmatpush.msrb.mxu3 %v2526_v36  ;;  %v2887_v30 = vld [vmem:[%s4791_s4] ss:$0 sm:$0xff]  ;;  %2585 = vmatpush.msra.mxu1 %v2580_v11  ;;  %v2570_v46 = vld [vmem:[%s4796_s9 + $0x28] sm:$0xff] }
 0x2cc   :  { %v2213_v51 = vadd.f32 %v2212_v42, %v1948_v24  ;;  %v2407_v24 = vrot.slane %v2406_v9, 2  ;;  %v2150_v28 = vrot.slane %v2149_v35, 1  ;;  %v2334_v42 = vadd.f32 %v2333_v8, %v2332_v1  ;;  %v2577_v1 = vld [vmem:[%s4796_s9 + $0x60] sm:$0xff] }
 0x2cd   :  { %v2371_v29 = vadd.f32 %v2370_v31, %v2369_v21  ;;  %v2261_v16 = vrot.slane %v2260_v41, 1  ;;  %v2298_v61 = vrot.slane %v2297_v63, 1  ;;  %v2575_v21 = vld [vmem:[%s4796_s9 + $0x50] sm:$0xff]  ;;  %v2573_v19 = vld [vmem:[%s4796_s9 + $0x40] sm:$0xff] }
 0x2ce   :  { %v2214_v12 = vadd.f32 %v2213_v51, %v1949_v26  ;;  %v2188_v26 = vadd.f32 %v2187_v53, %v2186_v23  ;;  %v2408_v34 = vadd.f32 %v2407_v24, %v2406_v9  ;;  %v2151_v59 = vadd.f32 %v2150_v28, %v2149_v35  ;;  %v2572_v23 = vld [vmem:[%s4796_s9 + $0x38] sm:$0xff]  ;;  %v2571_v9 = vld [vmem:[%s4796_s9 + $0x30] sm:$0xff]  ;;  %v2888_v8 = vld [vmem:[%s4793_s6] ss:$0 sm:$0xff] }
 0x2cf   :  { %v2335_v25 = vrot.slane %v2334_v42, 1  ;;  %v2262_v50 = vadd.f32 %v2261_v16, %v2260_v41  ;;  %v2299_v55 = vadd.f32 %v2298_v61, %v2297_v63  ;;  %v2568_v35 = vld [vmem:[%s4796_s9 + $0x18] sm:$0xff]  ;;  %v2567_v53 = vld [vmem:[%s4796_s9 + $0x10] sm:$0xff]  ;;  %v2566_v24 = vld [vmem:[%s4796_s9 + $0x8] sm:$0xff] }
 0x2d0   :  { %v2215_v4 = vadd.f32 %v2214_v12, %v1950_v27  ;;  %v2372_v27 = vrot.slane %v2371_v29, 1  ;;  %v2412_v12 = vmul.f32 0.00390625, %v2188_v26  ;;  %v2409_v44 = vrot.slane %v2408_v34, 1  ;;  %v2565_v63 = vld [vmem:[%s4796_s9] sm:$0xff] }
 0x2d1   :  { %v2411_v18 = vmul.f32 0.00390625, %v2151_v59  ;;  %v2336_v10 = vadd.f32 %v2335_v25, %v2334_v42  ;;  %v2415_v5 = vmul.f32 0.00390625, %v2299_v55 }
 0x2d2   :  { %v2216_v32 = vadd.f32 %v2215_v4, %v1951_v49  ;;  %v2373_v20 = vadd.f32 %v2372_v27, %v2371_v29  ;;  %v2414_v49 = vmul.f32 0.00390625, %v2262_v50  ;;  %v2410_v40 = vadd.f32 %v2409_v44, %v2408_v34 }
 0x2d3   :  { %v2448_v37 = vsel %vm2447_vm2, %v2412_v12, %v2411_v18  ;;  %v2416_v4 = vmul.f32 0.00390625, %v2336_v10 }
 0x2d4   :  { %v2217_v60 = vadd.f32 %v2216_v32, %v1952_v2  ;;  %v2417_v52 = vmul.f32 0.00390625, %v2373_v20  ;;  %v2418_v3 = vmul.f32 0.00390625, %v2410_v40  ;;  %v2525_v32 = vld [vmem:[%s4794_s7 + $0x8] sm:$0xff] }
 0x2d5   :  { %2558 = vmatpush.msrb.mxu3 %v2525_v32 }
 0x2d6   :  { %v2218_v39 = vadd.f32 %v2217_v60, %v1953_v45  ;;  %v2579_v60 = vld [vmem:[%s4796_s9 + $0x70] sm:$0xff] }
 0x2d7   :  { %2559 = vmatpush.msrb.mxu3 %v2524_v17  ;;  %2586 = vmatpush.msra.mxu1 %v2579_v60 }
 0x2d8   :  { %v2219_v57 = vadd.f32 %v2218_v39, %v1954_v58  ;;  %v2576_v58 = vld [vmem:[%s4796_s9 + $0x58] sm:$0xff]  ;;  %v2574_v39 = vld [vmem:[%s4796_s9 + $0x48] sm:$0xff] }
 0x2d9   :  { %2587 = vmatpush.msra.mxu1 %v2578_v48 }
 0x2da   :  { %v2220_v13 = vrot.slane %v2219_v57, 4 }
 0x2db   :  { %2588 = vmatpush.msra.mxu1 %v2577_v1 }
 0x2dc   :  { %v2221_v6 = vadd.f32 %v2220_v13, %v2219_v57  ;;  %v2569_v57 = vld [vmem:[%s4796_s9 + $0x20] sm:$0xff] }
 0x2dd   :  { %2589 = vmatpush.msra.mxu1 %v2576_v58 }
 0x2de   :  { %v2222_v56 = vrot.slane %v2221_v6, 2 }
 0x2df   :  { %2590 = vmatpush.msra.mxu1 %v2575_v21 }
 0x2e0   :  { %v2223_v51 = vadd.f32 %v2222_v56, %v2221_v6  ;;  %v2889_v6 = vld [vmem:[%s4795_s8] ss:$0 sm:$0xff] }
 0x2e1   :  { %2591 = vmatpush.msra.mxu1 %v2574_v39  ;;  %v2890_v56 = vld [vmem:[%s4797_s10] ss:$0 sm:$0xff] }
 0x2e2   :  { %v2224_v15 = vrot.slane %v2223_v51, 1 }
 0x2e3   :  { %2592 = vmatpush.msra.mxu1 %v2573_v19 }
 0x2e4   :  { %v2225_v38 = vadd.f32 %v2224_v15, %v2223_v51 }
 0x2e5   :  { %2593 = vmatpush.msra.mxu1 %v2572_v23 }
 0x2e6   :  { %v2413_v43 = vmul.f32 0.00390625, %v2225_v38 }
 0x2e7   :  { %2594 = vmatpush.msra.mxu1 %v2571_v9 }
 0x2e8   :  { %v2450_v54 = vsel %vm2449_vm3, %v2413_v43, %v2448_v37 }
 0x2e9   :  { %v2452_v47 = vsel %vm2451_vm4, %v2414_v49, %v2450_v54  ;;  %2595 = vmatpush.msra.mxu1 %v2570_v46 }
 0x2ea   :  { %v2454_v7 = vsel %vm2453_vm5, %v2415_v5, %v2452_v47 }
 0x2eb   :  { %v2456_v2 = vsel %vm2455_vm6, %v2416_v4, %v2454_v7  ;;  %2596 = vmatpush.msra.mxu1 %v2569_v57 }
 0x2ec   :  { %v2458_v14 = vsel %vm2457_vm7, %v2417_v52, %v2456_v2 }
 0x2ed   :  { %v2460_v33 = vsel %vm2459_vm8, %v2418_v3, %v2458_v14  ;;  %2597 = vmatpush.msra.mxu1 %v2568_v35 }
 0x2ee   :  { %2478 = vmatmul.f32.vlgmr.msrb.gmra.mxu1 %v2460_v33 }
 0x2ef   :  { %2598 = vmatpush.msra.mxu1 %v2567_v53 }
 0x2f1   :  { %2599 = vmatpush.msra.mxu1 %v2566_v24 }
 0x2f3   :  { %2600 = vmatpush.msra.mxu1 %v2565_v63 }
 0x36b   :  { %v2479_v0 = vpop.f32.mrf.mxu1 }
 0x36c   :  { %v2480_v62 = vadd.f32 %v2887_v30, %v2479_v0 }
 0x36e   :  { %v2482_v45 = vmax.f32 %v2480_v62, 0.0 }
 0x370   :  { %2519 = vmatmul.f32.vlgmr.msrb.gmra.mxu2 %v2482_v45 }
 0x3f3   :  { %v2520_v31 = vpop.f32.mrf.mxu2 }
 0x3f4   :  { %v2521_v13 = vadd.f32 %v2888_v8, %v2520_v31 }
 0x3f6   :  { %v2523_v41 = vmax.f32 %v2521_v13, 0.0 }
 0x3f8   :  { %2560 = vmatmul.f32.vlgmr.msrb.gmra.mxu3 %v2523_v41 }
 0x47b   :  { %v2561_v28 = vpop.f32.mrf.mxu3 }
 0x47c   :  { %v2562_v42 = vadd.f32 %v2889_v6, %v2561_v28 }
 0x47e   :  { %v2564_v29 = vmax.f32 %v2562_v42, 0.0 }
 0x480   :  { %2601 = vmatmul.f32.vlgmr.msra.gmra.mxu1 %v2564_v29 }
 0x4fd   :  { %v2602_v16 = vpop.f32.mrf.mxu1 }
 0x4fe   :  { %v2603_v26 = vadd.f32 %v2890_v56, %v2602_v16 }
 0x500   :  { %2605 = vst [vmem:[#allocation2] sm:$0xff] %v2603_v26 }
 0x501   :  { %2616 = dma.vmem_to_hbm [thread:$0]  %s2612_s17, 128, %s2614_s19, [#allocation3]  }
 0x502   :  { %2917 = dma.done.wait [#allocation3], 128  }
 0x503   :  { %2918 = vsyncadd [#allocation3], 4294967168 }
 0x504   :  { %2621 = vsyncpa [#allocation3], 1 }

</bundles_post_ra>
